<compile_context>
chip_gen: v5e
topology: v5e:2x2
jax: 0.10.0
libtpu: 0.0.40
codegen_flags: <defaults>
</compile_context>

<pallas_src>
import functools

import jax
import jax.numpy as jnp
from jax import lax
from jax.experimental import pallas as pl
from jax.experimental.pallas import tpu as pltpu

# ---- scaled-down hyperparameters (structure identical to the module) ----
VOCAB_SIZE = 128          # len(chars) in the original; synthetic here
N_EMBD     = 128          # 384 in the original
N_HEAD     = 4            # 6 in the original
HEAD_SIZE  = N_EMBD // N_HEAD
N_LAYER    = 2            # 6 in the original
BLOCK_SIZE = 16           # 256 in the original (max context length)
FFN_HIDDEN = 4 * N_EMBD

LN_EPS  = 1e-5            # torch.nn.LayerNorm default
NEG_INF = -1e30           # finite "masked" value (scores stay f32)

# rows of the packed per-layer vector slab (L, 8, FFN_HIDDEN)
ROW_LN1_G, ROW_LN1_B, ROW_BO, ROW_LN2_G, ROW_LN2_B, ROW_B1, ROW_B2 = range(7)


def _layernorm(x, g, b):
    mean = jnp.mean(x, axis=-1, keepdims=True)
    var = jnp.mean(jnp.square(x - mean), axis=-1, keepdims=True)
    return (x - mean) * lax.rsqrt(var + LN_EPS) * g + b


# ---------------------------------------------------------------------------
# One kernel for the whole model: grid=(N_LAYER,) over layer-stacked weights.
#   inputs : x_in, wqkv[l], wo[l], w1[l], w2[l], vec-slab[l], lm_w, lm_b
#   outputs: logits (written only on the last grid step)
#   scratch: x (B*T, C) residual stream, attn (B*T, C) head-output slab
# ---------------------------------------------------------------------------
def model_kernel(x_in_ref, wqkv_ref, wo_ref, w1_ref, w2_ref, vec_ref,
                 lm_w_ref, lm_b_ref, logits_ref, x_ref, attn_ref,
                 *, batch, seq, n_head, head_size, scale):
    layer = pl.program_id(0)
    c = N_EMBD

    @pl.when(layer == 0)
    def _():
        x_ref[...] = x_in_ref[...]          # residual stream enters VMEM once

    x = x_ref[...]                          # (B*T, C) f32, VMEM-resident

    # packed per-layer vectors (one DMA per layer)
    ln1_g = vec_ref[ROW_LN1_G:ROW_LN1_G + 1, :c]
    ln1_b = vec_ref[ROW_LN1_B:ROW_LN1_B + 1, :c]
    bo    = vec_ref[ROW_BO:ROW_BO + 1, :c]
    ln2_g = vec_ref[ROW_LN2_G:ROW_LN2_G + 1, :c]
    ln2_b = vec_ref[ROW_LN2_B:ROW_LN2_B + 1, :c]
    b1    = vec_ref[ROW_B1:ROW_B1 + 1, :]
    b2    = vec_ref[ROW_B2:ROW_B2 + 1, :c]

    # --- LayerNorm1 fused with merged QKV projection (bias=False) ---
    h = _layernorm(x, ln1_g, ln1_b)
    qkv = jnp.dot(h.astype(jnp.bfloat16), wqkv_ref[...],
                  preferred_element_type=jnp.float32)            # (B*T, 3C) f32
    qkv = qkv.astype(jnp.bfloat16)          # single hoisted cast for all heads
    q = qkv[:, :c].reshape(batch, seq, c)
    k = qkv[:, c:2 * c].reshape(batch, seq, c)
    v = qkv[:, 2 * c:].reshape(batch, seq, c)

    # --- causal multi-head self-attention (batched over B, static head loop) ---
    row = lax.broadcasted_iota(jnp.int32, (seq, seq), 0)
    col = lax.broadcasted_iota(jnp.int32, (seq, seq), 1)
    causal = (col <= row)[None, :, :]                            # (1, T, T)

    for hh in range(n_head):                # static unroll, n_head is tiny
        l0 = hh * head_size
        qh = q[:, :, l0:l0 + head_size]     # (B, T, hs) bf16
        kh = k[:, :, l0:l0 + head_size]
        vh = v[:, :, l0:l0 + head_size]
        s = jnp.einsum('bqd,bkd->bqk', qh, kh,
                       preferred_element_type=jnp.float32) * scale
        s = jnp.where(causal, s, NEG_INF)
        m = jnp.max(s, axis=-1, keepdims=True)
        p = jnp.exp(s - m)
        p = p * pl.reciprocal(jnp.sum(p, axis=-1, keepdims=True), approx=True)
        oh = jnp.einsum('bqk,bkd->bqd', p.astype(jnp.bfloat16), vh,
                        preferred_element_type=jnp.float32)      # (B, T, hs) f32
        # write head result straight into its lane slice (no concat/repack)
        attn_ref[:, l0:l0 + head_size] = oh.reshape(batch * seq, head_size)

    # --- output projection + residual ---
    sa = jnp.dot(attn_ref[...].astype(jnp.bfloat16), wo_ref[...],
                 preferred_element_type=jnp.float32) + bo
    x = x + sa

    # --- LayerNorm2 fused with feed-forward + residual ---
    h2 = _layernorm(x, ln2_g, ln2_b)
    f = jnp.dot(h2.astype(jnp.bfloat16), w1_ref[...],
                preferred_element_type=jnp.float32) + b1
    f = jnp.maximum(f, 0.0)                                       # ReLU
    f = jnp.dot(f.astype(jnp.bfloat16), w2_ref[...],
                preferred_element_type=jnp.float32) + b2
    x = x + f
    x_ref[...] = x
    # dropout(p=0.2) is identity in eval mode (see TODO at top).

    # --- lm_head, fused into the last grid step (no ln_f: not used in forward) ---
    @pl.when(layer == pl.num_programs(0) - 1)
    def _():
        logits_ref[...] = jnp.dot(x.astype(jnp.bfloat16), lm_w_ref[...],
                                  preferred_element_type=jnp.float32) + lm_b_ref[...]


# ---------------------------------------------------------------------------
# Parameter init (deterministic, synthetic). Weight matrices stored bf16
# (MXU operands), LayerNorm params / biases stay f32.
# ---------------------------------------------------------------------------
def init_params(key):
    C, F, L, V = N_EMBD, FFN_HIDDEN, N_LAYER, VOCAB_SIZE
    ks = jax.random.split(key, 10)

    def w(k, shape, dtype=jnp.bfloat16, s=0.02):
        return (jax.random.normal(k, shape, jnp.float32) * s).astype(dtype)

    # packed per-layer vector slab: [ln1_g, ln1_b, bo, ln2_g, ln2_b, b1, b2, pad]
    vecs = jnp.zeros((L, 8, F), jnp.float32)
    vecs = vecs.at[:, ROW_LN1_G, :C].set(1.0)
    vecs = vecs.at[:, ROW_LN2_G, :C].set(1.0)
    vecs = vecs.at[:, ROW_BO, :C].set(w(ks[5], (L, C), jnp.float32))
    vecs = vecs.at[:, ROW_B1, :F].set(w(ks[6], (L, F), jnp.float32))
    vecs = vecs.at[:, ROW_B2, :C].set(w(ks[7], (L, C), jnp.float32))

    return {
        "tok_emb": w(ks[0], (V, C), jnp.float32),
        "pos_emb": w(ks[1], (BLOCK_SIZE, C), jnp.float32),
        # per-head q/k/v Linears (bias=False) merged into one (C, 3C) weight/layer
        "wqkv": w(ks[2], (L, C, 3 * C)),
        "wo":   w(ks[3], (L, C, C)),
        "w1":   w(ks[4], (L, C, F)),
        "w2":   w(ks[8], (L, F, C)),
        "vecs": vecs,
        "lm_w": w(ks[9], (C, V)),
        "lm_b": jnp.zeros((V,), jnp.float32),
        # ln_f of the reference module is defined but never used in forward();
        # intentionally omitted here.
    }


# ---------------------------------------------------------------------------
# Forward pass: embedding gather in plain JAX, everything else in ONE pallas_call.
# ---------------------------------------------------------------------------
def model_forward(params, idx):
    B, T = idx.shape
    C, F, V, L = N_EMBD, FFN_HIDDEN, VOCAB_SIZE, N_LAYER

    # TODO(synk): token-row gather kept in plain JAX (jnp.take); a scalar-prefetch
    #             pl.Element row-gather kernel adds nothing at this size.
    tok_emb = jnp.take(params["tok_emb"], idx, axis=0)       # (B, T, C)
    pos_emb = params["pos_emb"][:T]                          # (T, C)
    x = (tok_emb + pos_emb).reshape(B * T, C)                # (B*T, C), lane-dense

    kern = functools.partial(
        model_kernel, batch=B, seq=T, n_head=N_HEAD,
        head_size=HEAD_SIZE, scale=float(N_EMBD) ** (-0.5))

    logits = pl.pallas_call(
        kern,
        out_shape=jax.ShapeDtypeStruct((B * T, V), jnp.float32),
        grid_spec=pltpu.PrefetchScalarGridSpec(
            num_scalar_prefetch=0,
            grid=(L,),
            in_specs=[
                pl.BlockSpec((B * T, C), lambda l: (0, 0)),          # x_in (once)
                pl.BlockSpec((None, C, 3 * C), lambda l: (l, 0, 0)), # wqkv[l]
                pl.BlockSpec((None, C, C),     lambda l: (l, 0, 0)), # wo[l]
                pl.BlockSpec((None, C, F),     lambda l: (l, 0, 0)), # w1[l]
                pl.BlockSpec((None, F, C),     lambda l: (l, 0, 0)), # w2[l]
                pl.BlockSpec((None, 8, F),     lambda l: (l, 0, 0)), # vec slab[l]
                pl.BlockSpec((C, V), lambda l: (0, 0)),              # lm_w (once)
                pl.BlockSpec((1, V), lambda l: (0, 0)),              # lm_b (once)
            ],
            out_specs=pl.BlockSpec((B * T, V), lambda l: (0, 0)),
            scratch_shapes=[
                pltpu.VMEM((B * T, C), jnp.float32),   # residual stream x
                pltpu.VMEM((B * T, C), jnp.float32),   # attention head outputs
            ],
        ),
        compiler_params=pltpu.CompilerParams(
            dimension_semantics=("arbitrary",),        # layers are sequential
            vmem_limit_bytes=8 * 1024 * 1024),
    )(x, params["wqkv"], params["wo"], params["w1"], params["w2"],
      params["vecs"], params["lm_w"], params["lm_b"].reshape(1, V))

    return logits.reshape(B, T, V), None   # targets=None -> loss=None


# ---------------------------------------------------------------------------
if __name__ == "__main__":
    key = jax.random.PRNGKey(0)
    pkey, ikey = jax.random.split(key)

    params = init_params(pkey)

    B, T = 2, 16   # T <= BLOCK_SIZE, B*T = 32 rows (multiple of 8 sublanes)
    assert T <= BLOCK_SIZE and (B * T) % 8 == 0
    idx = jax.random.randint(ikey, (B, T), 0, VOCAB_SIZE, dtype=jnp.int32)

    logits, loss = jax.jit(model_forward)(params, idx)
    logits = jax.block_until_ready(logits)

    assert logits.shape == (B, T, VOCAB_SIZE)
    assert logits.dtype == jnp.float32
    assert loss is None
    assert bool(jnp.all(jnp.isfinite(logits)))
    print("KERNEL_OK")
</pallas_src>

<mosaic_0001>
module attributes {stable_mosaic.version = 11 : i64} {
  func.func @model_kernel(%arg0: i32, %arg1: memref<32x128xf32, #tpu.memory_space<vmem>>, %arg2: memref<1x128x384xbf16, #tpu.memory_space<vmem>>, %arg3: memref<1x128x128xbf16, #tpu.memory_space<vmem>>, %arg4: memref<1x128x512xbf16, #tpu.memory_space<vmem>>, %arg5: memref<1x512x128xbf16, #tpu.memory_space<vmem>>, %arg6: memref<1x8x512xf32, #tpu.memory_space<vmem>>, %arg7: memref<128x128xbf16, #tpu.memory_space<vmem>>, %arg8: memref<1x128xf32, #tpu.memory_space<vmem>>, %arg9: memref<32x128xf32, #tpu.memory_space<vmem>>, %arg10: memref<32x128xf32, #tpu.memory_space<vmem>>, %arg11: memref<32x128xf32, #tpu.memory_space<vmem>>) attributes {dimension_semantics = [#tpu.dimension_semantics<arbitrary>], iteration_bounds = array<i64: 2>, scalar_prefetch = 0 : i64, scratch_operands = 2 : i64, tpu.core_type = #tpu.core_type<tc>, window_params = [{pipeline_mode = #tpu.pipeline_mode<synchronous>, transform_indices = @transform_0, window_bounds = array<i64: 32, 128>}, {transform_indices = @transform_1, window_bounds = array<i64: 1, 128, 384>}, {transform_indices = @transform_2, window_bounds = array<i64: 1, 128, 128>}, {transform_indices = @transform_3, window_bounds = array<i64: 1, 128, 512>}, {transform_indices = @transform_4, window_bounds = array<i64: 1, 512, 128>}, {transform_indices = @transform_5, window_bounds = array<i64: 1, 8, 512>}, {pipeline_mode = #tpu.pipeline_mode<synchronous>, transform_indices = @transform_6, window_bounds = array<i64: 128, 128>}, {pipeline_mode = #tpu.pipeline_mode<synchronous>, transform_indices = @transform_7, window_bounds = array<i64: 1, 128>}, {pipeline_mode = #tpu.pipeline_mode<synchronous>, transform_indices = @transform_8, window_bounds = array<i64: 32, 128>}]} {
    %c0_i32 = arith.constant 0 : i32
    %0 = arith.cmpi eq, %arg0, %c0_i32 : i32
    %1 = arith.extui %0 : i1 to i32
    %c0_i32_0 = arith.constant 0 : i32
    %2 = arith.cmpi ne, %1, %c0_i32_0 : i32
    scf.if %2 {
      %c0_77 = arith.constant 0 : index
      %c0_78 = arith.constant 0 : index
      %200 = vector.load %arg1[%c0_77, %c0_78] : memref<32x128xf32, #tpu.memory_space<vmem>>, vector<32x128xf32>
      %c0_79 = arith.constant 0 : index
      %c0_80 = arith.constant 0 : index
      %201 = vector.load %arg10[%c0_79, %c0_80] : memref<32x128xf32, #tpu.memory_space<vmem>>, vector<32x128xf32>
      tpu.vector_store %arg10[%c0_79, %c0_80], %200 {strides = array<i32>} : memref<32x128xf32, #tpu.memory_space<vmem>>, vector<32x128xf32>,
    } else {
    }
    %c0 = arith.constant 0 : index
    %c0_1 = arith.constant 0 : index
    %3 = vector.load %arg10[%c0, %c0_1] : memref<32x128xf32, #tpu.memory_space<vmem>>, vector<32x128xf32>
    %c0_2 = arith.constant 0 : index
    %c0_3 = arith.constant 0 : index
    %c0_4 = arith.constant 0 : index
    %4 = vector.load %arg6[%c0_2, %c0_3, %c0_4] : memref<1x8x512xf32, #tpu.memory_space<vmem>>, vector<1x1x128xf32>
    %5 = vector.shape_cast %4 : vector<1x1x128xf32> to vector<1x128xf32>
    %c0_5 = arith.constant 0 : index
    %c1 = arith.constant 1 : index
    %c0_6 = arith.constant 0 : index
    %6 = vector.load %arg6[%c0_5, %c1, %c0_6] : memref<1x8x512xf32, #tpu.memory_space<vmem>>, vector<1x1x128xf32>
    %7 = vector.shape_cast %6 : vector<1x1x128xf32> to vector<1x128xf32>
    %c0_7 = arith.constant 0 : index
    %c2 = arith.constant 2 : index
    %c0_8 = arith.constant 0 : index
    %8 = vector.load %arg6[%c0_7, %c2, %c0_8] : memref<1x8x512xf32, #tpu.memory_space<vmem>>, vector<1x1x128xf32>
    %9 = vector.shape_cast %8 : vector<1x1x128xf32> to vector<1x128xf32>
    %c0_9 = arith.constant 0 : index
    %c3 = arith.constant 3 : index
    %c0_10 = arith.constant 0 : index
    %10 = vector.load %arg6[%c0_9, %c3, %c0_10] : memref<1x8x512xf32, #tpu.memory_space<vmem>>, vector<1x1x128xf32>
    %11 = vector.shape_cast %10 : vector<1x1x128xf32> to vector<1x128xf32>
    %c0_11 = arith.constant 0 : index
    %c4 = arith.constant 4 : index
    %c0_12 = arith.constant 0 : index
    %12 = vector.load %arg6[%c0_11, %c4, %c0_12] : memref<1x8x512xf32, #tpu.memory_space<vmem>>, vector<1x1x128xf32>
    %13 = vector.shape_cast %12 : vector<1x1x128xf32> to vector<1x128xf32>
    %c0_13 = arith.constant 0 : index
    %c5 = arith.constant 5 : index
    %c0_14 = arith.constant 0 : index
    %14 = vector.load %arg6[%c0_13, %c5, %c0_14] : memref<1x8x512xf32, #tpu.memory_space<vmem>>, vector<1x1x512xf32>
    %15 = vector.shape_cast %14 : vector<1x1x512xf32> to vector<1x512xf32>
    %c0_15 = arith.constant 0 : index
    %c6 = arith.constant 6 : index
    %c0_16 = arith.constant 0 : index
    %16 = vector.load %arg6[%c0_15, %c6, %c0_16] : memref<1x8x512xf32, #tpu.memory_space<vmem>>, vector<1x1x128xf32>
    %17 = vector.shape_cast %16 : vector<1x1x128xf32> to vector<1x128xf32>
    %cst = arith.constant dense<0.000000e+00> : vector<32xf32>
    %18 = vector.multi_reduction <add>, %3, %cst [1] : vector<32x128xf32> to vector<32xf32>
    %19 = vector.shape_cast %18 : vector<32xf32> to vector<32x1xf32>
    %cst_17 = arith.constant 1.280000e+02 : f32
    %20 = vector.broadcast %cst_17 : f32 to vector<32x1xf32>
    %21 = arith.divf %19, %20 : vector<32x1xf32>
    %22 = vector.broadcast %21 : vector<32x1xf32> to vector<32x128xf32>
    %23 = arith.subf %3, %22 : vector<32x128xf32>
    %24 = arith.mulf %23, %23 : vector<32x128xf32>
    %cst_18 = arith.constant dense<0.000000e+00> : vector<32xf32>
    %25 = vector.multi_reduction <add>, %24, %cst_18 [1] : vector<32x128xf32> to vector<32xf32>
    %26 = vector.shape_cast %25 : vector<32xf32> to vector<32x1xf32>
    %cst_19 = arith.constant 1.280000e+02 : f32
    %27 = vector.broadcast %cst_19 : f32 to vector<32x1xf32>
    %28 = arith.divf %26, %27 : vector<32x1xf32>
    %29 = vector.broadcast %21 : vector<32x1xf32> to vector<32x128xf32>
    %30 = arith.subf %3, %29 : vector<32x128xf32>
    %cst_20 = arith.constant 9.99999974E-6 : f32
    %31 = vector.broadcast %cst_20 : f32 to vector<32x1xf32>
    %32 = arith.addf %28, %31 : vector<32x1xf32>
    %33 = math.rsqrt %32 : vector<32x1xf32>
    %34 = vector.broadcast %33 : vector<32x1xf32> to vector<32x128xf32>
    %35 = arith.mulf %30, %34 : vector<32x128xf32>
    %36 = vector.broadcast %5 : vector<1x128xf32> to vector<32x128xf32>
    %37 = arith.mulf %35, %36 : vector<32x128xf32>
    %38 = vector.broadcast %7 : vector<1x128xf32> to vector<32x128xf32>
    %39 = arith.addf %37, %38 : vector<32x128xf32>
    %40 = arith.truncf %39 : vector<32x128xf32> to vector<32x128xbf16>
    %c0_21 = arith.constant 0 : index
    %c0_22 = arith.constant 0 : index
    %c0_23 = arith.constant 0 : index
    %41 = vector.load %arg2[%c0_21, %c0_22, %c0_23] : memref<1x128x384xbf16, #tpu.memory_space<vmem>>, vector<1x128x384xbf16>
    %42 = vector.shape_cast %41 : vector<1x128x384xbf16> to vector<128x384xbf16>
    %cst_24 = arith.constant dense<0.000000e+00> : vector<32x384xf32>
    %43 = tpu.matmul %40, %42, %cst_24 {dimension_numbers = #tpu.dot_dimension_numbers<[1], [0], [0], [1], [0, 0, 1, 1], [], []>} : vector<32x128xbf16>, vector<128x384xbf16>, vector<32x384xf32> -> vector<32x384xf32>
    %44 = arith.truncf %43 : vector<32x384xf32> to vector<32x384xbf16>
    %45 = vector.extract_strided_slice %44 {offsets = [0, 0], sizes = [32, 128], strides = [1, 1]} : vector<32x384xbf16> to vector<32x128xbf16>
    %46 = vector.shape_cast %45 : vector<32x128xbf16> to vector<2x16x128xbf16>
    %47 = vector.extract_strided_slice %44 {offsets = [0, 128], sizes = [32, 128], strides = [1, 1]} : vector<32x384xbf16> to vector<32x128xbf16>
    %48 = vector.shape_cast %47 : vector<32x128xbf16> to vector<2x16x128xbf16>
    %49 = vector.extract_strided_slice %44 {offsets = [0, 256], sizes = [32, 128], strides = [1, 1]} : vector<32x384xbf16> to vector<32x128xbf16>
    %50 = vector.shape_cast %49 : vector<32x128xbf16> to vector<2x16x128xbf16>
    %51 = tpu.iota {dimensions = array<i32: 0>} : vector<16x16xi32>
    %52 = tpu.iota {dimensions = array<i32: 1>} : vector<16x16xi32>
    %53 = arith.cmpi sle, %52, %51 : vector<16x16xi32>
    %54 = vector.shape_cast %53 : vector<16x16xi1> to vector<1x16x16xi1>
    %55 = vector.extract_strided_slice %46 {offsets = [0, 0, 0], sizes = [2, 16, 32], strides = [1, 1, 1]} : vector<2x16x128xbf16> to vector<2x16x32xbf16>
    %56 = vector.extract_strided_slice %48 {offsets = [0, 0, 0], sizes = [2, 16, 32], strides = [1, 1, 1]} : vector<2x16x128xbf16> to vector<2x16x32xbf16>
    %57 = vector.extract_strided_slice %50 {offsets = [0, 0, 0], sizes = [2, 16, 32], strides = [1, 1, 1]} : vector<2x16x128xbf16> to vector<2x16x32xbf16>
    "tpu.trace_start"() <{level = 10 : i32, message = "bqd,bkd->bqk"}> : () -> ()
    %cst_25 = arith.constant dense<0.000000e+00> : vector<2x16x16xf32>
    %58 = tpu.matmul %55, %56, %cst_25 {dimension_numbers = #tpu.dot_dimension_numbers<[2], [2], [1], [1], [0, 0, 0, 1, 1, 1], [0], [0]>} : vector<2x16x32xbf16>, vector<2x16x32xbf16>, vector<2x16x16xf32> -> vector<2x16x16xf32>
    "tpu.trace_stop"() : () -> ()
    %cst_26 = arith.constant 0.0883883461 : f32
    %59 = vector.broadcast %cst_26 : f32 to vector<2x16x16xf32>
    %60 = arith.mulf %58, %59 : vector<2x16x16xf32>
    %cst_27 = arith.constant -1.000000e+30 : f32
    %61 = vector.shape_cast %54 : vector<1x16x16xi1> to vector<1x16x16xi1>
    %62 = vector.broadcast %61 : vector<1x16x16xi1> to vector<2x16x16xi1>
    %63 = vector.broadcast %cst_27 : f32 to vector<2x16x16xf32>
    %64 = arith.select %62, %60, %63 : vector<2x16x16xi1>, vector<2x16x16xf32>
    %cst_28 = arith.constant dense<0xFF800000> : vector<2x16xf32>
    %65 = vector.multi_reduction <maximumf>, %64, %cst_28 [2] : vector<2x16x16xf32> to vector<2x16xf32>
    %66 = vector.shape_cast %65 : vector<2x16xf32> to vector<2x16x1xf32>
    %67 = vector.broadcast %66 : vector<2x16x1xf32> to vector<2x16x16xf32>
    %68 = arith.subf %64, %67 : vector<2x16x16xf32>
    %69 = math.exp %68 : vector<2x16x16xf32>
    %cst_29 = arith.constant dense<0.000000e+00> : vector<2x16xf32>
    %70 = vector.multi_reduction <add>, %69, %cst_29 [2] : vector<2x16x16xf32> to vector<2x16xf32>
    %71 = vector.shape_cast %70 : vector<2x16xf32> to vector<2x16x1xf32>
    %72 = tpu.reciprocal %71 {approx = true} : vector<2x16x1xf32> -> vector<2x16x1xf32>
    %73 = vector.broadcast %72 : vector<2x16x1xf32> to vector<2x16x16xf32>
    %74 = arith.mulf %69, %73 : vector<2x16x16xf32>
    %75 = arith.truncf %74 : vector<2x16x16xf32> to vector<2x16x16xbf16>
    "tpu.trace_start"() <{level = 10 : i32, message = "bqk,bkd->bqd"}> : () -> ()
    %cst_30 = arith.constant dense<0.000000e+00> : vector<2x16x32xf32>
    %76 = tpu.matmul %75, %57, %cst_30 {dimension_numbers = #tpu.dot_dimension_numbers<[2], [1], [1], [2], [0, 0, 0, 1, 1, 2], [0], [0]>} : vector<2x16x16xbf16>, vector<2x16x32xbf16>, vector<2x16x32xf32> -> vector<2x16x32xf32>
    "tpu.trace_stop"() : () -> ()
    %77 = vector.shape_cast %76 : vector<2x16x32xf32> to vector<32x32xf32>
    %c0_31 = arith.constant 0 : index
    %c0_32 = arith.constant 0 : index
    %78 = vector.load %arg11[%c0_31, %c0_32] : memref<32x128xf32, #tpu.memory_space<vmem>>, vector<32x32xf32>
    tpu.vector_store %arg11[%c0_31, %c0_32], %77 {strides = array<i32>} : memref<32x128xf32, #tpu.memory_space<vmem>>, vector<32x32xf32>,
    %79 = vector.extract_strided_slice %46 {offsets = [0, 0, 32], sizes = [2, 16, 32], strides = [1, 1, 1]} : vector<2x16x128xbf16> to vector<2x16x32xbf16>
    %80 = vector.extract_strided_slice %48 {offsets = [0, 0, 32], sizes = [2, 16, 32], strides = [1, 1, 1]} : vector<2x16x128xbf16> to vector<2x16x32xbf16>
    %81 = vector.extract_strided_slice %50 {offsets = [0, 0, 32], sizes = [2, 16, 32], strides = [1, 1, 1]} : vector<2x16x128xbf16> to vector<2x16x32xbf16>
    "tpu.trace_start"() <{level = 10 : i32, message = "bqd,bkd->bqk"}> : () -> ()
    %cst_33 = arith.constant dense<0.000000e+00> : vector<2x16x16xf32>
    %82 = tpu.matmul %79, %80, %cst_33 {dimension_numbers = #tpu.dot_dimension_numbers<[2], [2], [1], [1], [0, 0, 0, 1, 1, 1], [0], [0]>} : vector<2x16x32xbf16>, vector<2x16x32xbf16>, vector<2x16x16xf32> -> vector<2x16x16xf32>
    "tpu.trace_stop"() : () -> ()
    %cst_34 = arith.constant 0.0883883461 : f32
    %83 = vector.broadcast %cst_34 : f32 to vector<2x16x16xf32>
    %84 = arith.mulf %82, %83 : vector<2x16x16xf32>
    %cst_35 = arith.constant -1.000000e+30 : f32
    %85 = vector.shape_cast %54 : vector<1x16x16xi1> to vector<1x16x16xi1>
    %86 = vector.broadcast %85 : vector<1x16x16xi1> to vector<2x16x16xi1>
    %87 = vector.broadcast %cst_35 : f32 to vector<2x16x16xf32>
    %88 = arith.select %86, %84, %87 : vector<2x16x16xi1>, vector<2x16x16xf32>
    %cst_36 = arith.constant dense<0xFF800000> : vector<2x16xf32>
    %89 = vector.multi_reduction <maximumf>, %88, %cst_36 [2] : vector<2x16x16xf32> to vector<2x16xf32>
    %90 = vector.shape_cast %89 : vector<2x16xf32> to vector<2x16x1xf32>
    %91 = vector.broadcast %90 : vector<2x16x1xf32> to vector<2x16x16xf32>
    %92 = arith.subf %88, %91 : vector<2x16x16xf32>
    %93 = math.exp %92 : vector<2x16x16xf32>
    %cst_37 = arith.constant dense<0.000000e+00> : vector<2x16xf32>
    %94 = vector.multi_reduction <add>, %93, %cst_37 [2] : vector<2x16x16xf32> to vector<2x16xf32>
    %95 = vector.shape_cast %94 : vector<2x16xf32> to vector<2x16x1xf32>
    %96 = tpu.reciprocal %95 {approx = true} : vector<2x16x1xf32> -> vector<2x16x1xf32>
    %97 = vector.broadcast %96 : vector<2x16x1xf32> to vector<2x16x16xf32>
    %98 = arith.mulf %93, %97 : vector<2x16x16xf32>
    %99 = arith.truncf %98 : vector<2x16x16xf32> to vector<2x16x16xbf16>
    "tpu.trace_start"() <{level = 10 : i32, message = "bqk,bkd->bqd"}> : () -> ()
    %cst_38 = arith.constant dense<0.000000e+00> : vector<2x16x32xf32>
    %100 = tpu.matmul %99, %81, %cst_38 {dimension_numbers = #tpu.dot_dimension_numbers<[2], [1], [1], [2], [0, 0, 0, 1, 1, 2], [0], [0]>} : vector<2x16x16xbf16>, vector<2x16x32xbf16>, vector<2x16x32xf32> -> vector<2x16x32xf32>
    "tpu.trace_stop"() : () -> ()
    %101 = vector.shape_cast %100 : vector<2x16x32xf32> to vector<32x32xf32>
    %c0_39 = arith.constant 0 : index
    %c32 = arith.constant 32 : index
    %102 = vector.load %arg11[%c0_39, %c32] : memref<32x128xf32, #tpu.memory_space<vmem>>, vector<32x32xf32>
    tpu.vector_store %arg11[%c0_39, %c32], %101 {strides = array<i32>} : memref<32x128xf32, #tpu.memory_space<vmem>>, vector<32x32xf32>,
    %103 = vector.extract_strided_slice %46 {offsets = [0, 0, 64], sizes = [2, 16, 32], strides = [1, 1, 1]} : vector<2x16x128xbf16> to vector<2x16x32xbf16>
    %104 = vector.extract_strided_slice %48 {offsets = [0, 0, 64], sizes = [2, 16, 32], strides = [1, 1, 1]} : vector<2x16x128xbf16> to vector<2x16x32xbf16>
    %105 = vector.extract_strided_slice %50 {offsets = [0, 0, 64], sizes = [2, 16, 32], strides = [1, 1, 1]} : vector<2x16x128xbf16> to vector<2x16x32xbf16>
    "tpu.trace_start"() <{level = 10 : i32, message = "bqd,bkd->bqk"}> : () -> ()
    %cst_40 = arith.constant dense<0.000000e+00> : vector<2x16x16xf32>
    %106 = tpu.matmul %103, %104, %cst_40 {dimension_numbers = #tpu.dot_dimension_numbers<[2], [2], [1], [1], [0, 0, 0, 1, 1, 1], [0], [0]>} : vector<2x16x32xbf16>, vector<2x16x32xbf16>, vector<2x16x16xf32> -> vector<2x16x16xf32>
    "tpu.trace_stop"() : () -> ()
    %cst_41 = arith.constant 0.0883883461 : f32
    %107 = vector.broadcast %cst_41 : f32 to vector<2x16x16xf32>
    %108 = arith.mulf %106, %107 : vector<2x16x16xf32>
    %cst_42 = arith.constant -1.000000e+30 : f32
    %109 = vector.shape_cast %54 : vector<1x16x16xi1> to vector<1x16x16xi1>
    %110 = vector.broadcast %109 : vector<1x16x16xi1> to vector<2x16x16xi1>
    %111 = vector.broadcast %cst_42 : f32 to vector<2x16x16xf32>
    %112 = arith.select %110, %108, %111 : vector<2x16x16xi1>, vector<2x16x16xf32>
    %cst_43 = arith.constant dense<0xFF800000> : vector<2x16xf32>
    %113 = vector.multi_reduction <maximumf>, %112, %cst_43 [2] : vector<2x16x16xf32> to vector<2x16xf32>
    %114 = vector.shape_cast %113 : vector<2x16xf32> to vector<2x16x1xf32>
    %115 = vector.broadcast %114 : vector<2x16x1xf32> to vector<2x16x16xf32>
    %116 = arith.subf %112, %115 : vector<2x16x16xf32>
    %117 = math.exp %116 : vector<2x16x16xf32>
    %cst_44 = arith.constant dense<0.000000e+00> : vector<2x16xf32>
    %118 = vector.multi_reduction <add>, %117, %cst_44 [2] : vector<2x16x16xf32> to vector<2x16xf32>
    %119 = vector.shape_cast %118 : vector<2x16xf32> to vector<2x16x1xf32>
    %120 = tpu.reciprocal %119 {approx = true} : vector<2x16x1xf32> -> vector<2x16x1xf32>
    %121 = vector.broadcast %120 : vector<2x16x1xf32> to vector<2x16x16xf32>
    %122 = arith.mulf %117, %121 : vector<2x16x16xf32>
    %123 = arith.truncf %122 : vector<2x16x16xf32> to vector<2x16x16xbf16>
    "tpu.trace_start"() <{level = 10 : i32, message = "bqk,bkd->bqd"}> : () -> ()
    %cst_45 = arith.constant dense<0.000000e+00> : vector<2x16x32xf32>
    %124 = tpu.matmul %123, %105, %cst_45 {dimension_numbers = #tpu.dot_dimension_numbers<[2], [1], [1], [2], [0, 0, 0, 1, 1, 2], [0], [0]>} : vector<2x16x16xbf16>, vector<2x16x32xbf16>, vector<2x16x32xf32> -> vector<2x16x32xf32>
    "tpu.trace_stop"() : () -> ()
    %125 = vector.shape_cast %124 : vector<2x16x32xf32> to vector<32x32xf32>
    %c0_46 = arith.constant 0 : index
    %c64 = arith.constant 64 : index
    %126 = vector.load %arg11[%c0_46, %c64] : memref<32x128xf32, #tpu.memory_space<vmem>>, vector<32x32xf32>
    tpu.vector_store %arg11[%c0_46, %c64], %125 {strides = array<i32>} : memref<32x128xf32, #tpu.memory_space<vmem>>, vector<32x32xf32>,
    %127 = vector.extract_strided_slice %46 {offsets = [0, 0, 96], sizes = [2, 16, 32], strides = [1, 1, 1]} : vector<2x16x128xbf16> to vector<2x16x32xbf16>
    %128 = vector.extract_strided_slice %48 {offsets = [0, 0, 96], sizes = [2, 16, 32], strides = [1, 1, 1]} : vector<2x16x128xbf16> to vector<2x16x32xbf16>
    %129 = vector.extract_strided_slice %50 {offsets = [0, 0, 96], sizes = [2, 16, 32], strides = [1, 1, 1]} : vector<2x16x128xbf16> to vector<2x16x32xbf16>
    "tpu.trace_start"() <{level = 10 : i32, message = "bqd,bkd->bqk"}> : () -> ()
    %cst_47 = arith.constant dense<0.000000e+00> : vector<2x16x16xf32>
    %130 = tpu.matmul %127, %128, %cst_47 {dimension_numbers = #tpu.dot_dimension_numbers<[2], [2], [1], [1], [0, 0, 0, 1, 1, 1], [0], [0]>} : vector<2x16x32xbf16>, vector<2x16x32xbf16>, vector<2x16x16xf32> -> vector<2x16x16xf32>
    "tpu.trace_stop"() : () -> ()
    %cst_48 = arith.constant 0.0883883461 : f32
    %131 = vector.broadcast %cst_48 : f32 to vector<2x16x16xf32>
    %132 = arith.mulf %130, %131 : vector<2x16x16xf32>
    %cst_49 = arith.constant -1.000000e+30 : f32
    %133 = vector.shape_cast %54 : vector<1x16x16xi1> to vector<1x16x16xi1>
    %134 = vector.broadcast %133 : vector<1x16x16xi1> to vector<2x16x16xi1>
    %135 = vector.broadcast %cst_49 : f32 to vector<2x16x16xf32>
    %136 = arith.select %134, %132, %135 : vector<2x16x16xi1>, vector<2x16x16xf32>
    %cst_50 = arith.constant dense<0xFF800000> : vector<2x16xf32>
    %137 = vector.multi_reduction <maximumf>, %136, %cst_50 [2] : vector<2x16x16xf32> to vector<2x16xf32>
    %138 = vector.shape_cast %137 : vector<2x16xf32> to vector<2x16x1xf32>
    %139 = vector.broadcast %138 : vector<2x16x1xf32> to vector<2x16x16xf32>
    %140 = arith.subf %136, %139 : vector<2x16x16xf32>
    %141 = math.exp %140 : vector<2x16x16xf32>
    %cst_51 = arith.constant dense<0.000000e+00> : vector<2x16xf32>
    %142 = vector.multi_reduction <add>, %141, %cst_51 [2] : vector<2x16x16xf32> to vector<2x16xf32>
    %143 = vector.shape_cast %142 : vector<2x16xf32> to vector<2x16x1xf32>
    %144 = tpu.reciprocal %143 {approx = true} : vector<2x16x1xf32> -> vector<2x16x1xf32>
    %145 = vector.broadcast %144 : vector<2x16x1xf32> to vector<2x16x16xf32>
    %146 = arith.mulf %141, %145 : vector<2x16x16xf32>
    %147 = arith.truncf %146 : vector<2x16x16xf32> to vector<2x16x16xbf16>
    "tpu.trace_start"() <{level = 10 : i32, message = "bqk,bkd->bqd"}> : () -> ()
    %cst_52 = arith.constant dense<0.000000e+00> : vector<2x16x32xf32>
    %148 = tpu.matmul %147, %129, %cst_52 {dimension_numbers = #tpu.dot_dimension_numbers<[2], [1], [1], [2], [0, 0, 0, 1, 1, 2], [0], [0]>} : vector<2x16x16xbf16>, vector<2x16x32xbf16>, vector<2x16x32xf32> -> vector<2x16x32xf32>
    "tpu.trace_stop"() : () -> ()
    %149 = vector.shape_cast %148 : vector<2x16x32xf32> to vector<32x32xf32>
    %c0_53 = arith.constant 0 : index
    %c96 = arith.constant 96 : index
    %150 = vector.load %arg11[%c0_53, %c96] : memref<32x128xf32, #tpu.memory_space<vmem>>, vector<32x32xf32>
    tpu.vector_store %arg11[%c0_53, %c96], %149 {strides = array<i32>} : memref<32x128xf32, #tpu.memory_space<vmem>>, vector<32x32xf32>,
    %c0_54 = arith.constant 0 : index
    %c0_55 = arith.constant 0 : index
    %151 = vector.load %arg11[%c0_54, %c0_55] : memref<32x128xf32, #tpu.memory_space<vmem>>, vector<32x128xf32>
    %152 = arith.truncf %151 : vector<32x128xf32> to vector<32x128xbf16>
    %c0_56 = arith.constant 0 : index
    %c0_57 = arith.constant 0 : index
    %c0_58 = arith.constant 0 : index
    %153 = vector.load %arg3[%c0_56, %c0_57, %c0_58] : memref<1x128x128xbf16, #tpu.memory_space<vmem>>, vector<1x128x128xbf16>
    %154 = vector.shape_cast %153 : vector<1x128x128xbf16> to vector<128x128xbf16>
    %cst_59 = arith.constant dense<0.000000e+00> : vector<32x128xf32>
    %155 = tpu.matmul %152, %154, %cst_59 {dimension_numbers = #tpu.dot_dimension_numbers<[1], [0], [0], [1], [0, 0, 1, 1], [], []>} : vector<32x128xbf16>, vector<128x128xbf16>, vector<32x128xf32> -> vector<32x128xf32>
    %156 = vector.broadcast %9 : vector<1x128xf32> to vector<32x128xf32>
    %157 = arith.addf %155, %156 : vector<32x128xf32>
    %158 = arith.addf %3, %157 : vector<32x128xf32>
    %cst_60 = arith.constant dense<0.000000e+00> : vector<32xf32>
    %159 = vector.multi_reduction <add>, %158, %cst_60 [1] : vector<32x128xf32> to vector<32xf32>
    %160 = vector.shape_cast %159 : vector<32xf32> to vector<32x1xf32>
    %cst_61 = arith.constant 1.280000e+02 : f32
    %161 = vector.broadcast %cst_61 : f32 to vector<32x1xf32>
    %162 = arith.divf %160, %161 : vector<32x1xf32>
    %163 = vector.broadcast %162 : vector<32x1xf32> to vector<32x128xf32>
    %164 = arith.subf %158, %163 : vector<32x128xf32>
    %165 = arith.mulf %164, %164 : vector<32x128xf32>
    %cst_62 = arith.constant dense<0.000000e+00> : vector<32xf32>
    %166 = vector.multi_reduction <add>, %165, %cst_62 [1] : vector<32x128xf32> to vector<32xf32>
    %167 = vector.shape_cast %166 : vector<32xf32> to vector<32x1xf32>
    %cst_63 = arith.constant 1.280000e+02 : f32
    %168 = vector.broadcast %cst_63 : f32 to vector<32x1xf32>
    %169 = arith.divf %167, %168 : vector<32x1xf32>
    %170 = vector.broadcast %162 : vector<32x1xf32> to vector<32x128xf32>
    %171 = arith.subf %158, %170 : vector<32x128xf32>
    %cst_64 = arith.constant 9.99999974E-6 : f32
    %172 = vector.broadcast %cst_64 : f32 to vector<32x1xf32>
    %173 = arith.addf %169, %172 : vector<32x1xf32>
    %174 = math.rsqrt %173 : vector<32x1xf32>
    %175 = vector.broadcast %174 : vector<32x1xf32> to vector<32x128xf32>
    %176 = arith.mulf %171, %175 : vector<32x128xf32>
    %177 = vector.broadcast %11 : vector<1x128xf32> to vector<32x128xf32>
    %178 = arith.mulf %176, %177 : vector<32x128xf32>
    %179 = vector.broadcast %13 : vector<1x128xf32> to vector<32x128xf32>
    %180 = arith.addf %178, %179 : vector<32x128xf32>
    %181 = arith.truncf %180 : vector<32x128xf32> to vector<32x128xbf16>
    %c0_65 = arith.constant 0 : index
    %c0_66 = arith.constant 0 : index
    %c0_67 = arith.constant 0 : index
    %182 = vector.load %arg4[%c0_65, %c0_66, %c0_67] : memref<1x128x512xbf16, #tpu.memory_space<vmem>>, vector<1x128x512xbf16>
    %183 = vector.shape_cast %182 : vector<1x128x512xbf16> to vector<128x512xbf16>
    %cst_68 = arith.constant dense<0.000000e+00> : vector<32x512xf32>
    %184 = tpu.matmul %181, %183, %cst_68 {dimension_numbers = #tpu.dot_dimension_numbers<[1], [0], [0], [1], [0, 0, 1, 1], [], []>} : vector<32x128xbf16>, vector<128x512xbf16>, vector<32x512xf32> -> vector<32x512xf32>
    %185 = vector.broadcast %15 : vector<1x512xf32> to vector<32x512xf32>
    %186 = arith.addf %184, %185 : vector<32x512xf32>
    %cst_69 = arith.constant 0.000000e+00 : f32
    %187 = vector.broadcast %cst_69 : f32 to vector<32x512xf32>
    %188 = arith.maximumf %186, %187 : vector<32x512xf32>
    %189 = arith.truncf %188 : vector<32x512xf32> to vector<32x512xbf16>
    %c0_70 = arith.constant 0 : index
    %c0_71 = arith.constant 0 : index
    %c0_72 = arith.constant 0 : index
    %190 = vector.load %arg5[%c0_70, %c0_71, %c0_72] : memref<1x512x128xbf16, #tpu.memory_space<vmem>>, vector<1x512x128xbf16>
    %191 = vector.shape_cast %190 : vector<1x512x128xbf16> to vector<512x128xbf16>
    %cst_73 = arith.constant dense<0.000000e+00> : vector<32x128xf32>
    %192 = tpu.matmul %189, %191, %cst_73 {dimension_numbers = #tpu.dot_dimension_numbers<[1], [0], [0], [1], [0, 0, 1, 1], [], []>} : vector<32x512xbf16>, vector<512x128xbf16>, vector<32x128xf32> -> vector<32x128xf32>
    %193 = vector.broadcast %17 : vector<1x128xf32> to vector<32x128xf32>
    %194 = arith.addf %192, %193 : vector<32x128xf32>
    %195 = arith.addf %158, %194 : vector<32x128xf32>
    %c0_74 = arith.constant 0 : index
    %c0_75 = arith.constant 0 : index
    %196 = vector.load %arg10[%c0_74, %c0_75] : memref<32x128xf32, #tpu.memory_space<vmem>>, vector<32x128xf32>
    tpu.vector_store %arg10[%c0_74, %c0_75], %195 {strides = array<i32>} : memref<32x128xf32, #tpu.memory_space<vmem>>, vector<32x128xf32>,
    %c1_i32 = arith.constant 1 : i32
    %197 = arith.cmpi eq, %arg0, %c1_i32 : i32
    %198 = arith.extui %197 : i1 to i32
    %c0_i32_76 = arith.constant 0 : i32
    %199 = arith.cmpi ne, %198, %c0_i32_76 : i32
    scf.if %199 {
      %200 = arith.truncf %195 : vector<32x128xf32> to vector<32x128xbf16>
      %c0_77 = arith.constant 0 : index
      %c0_78 = arith.constant 0 : index
      %201 = vector.load %arg7[%c0_77, %c0_78] : memref<128x128xbf16, #tpu.memory_space<vmem>>, vector<128x128xbf16>
      %cst_79 = arith.constant dense<0.000000e+00> : vector<32x128xf32>
      %202 = tpu.matmul %200, %201, %cst_79 {dimension_numbers = #tpu.dot_dimension_numbers<[1], [0], [0], [1], [0, 0, 1, 1], [], []>} : vector<32x128xbf16>, vector<128x128xbf16>, vector<32x128xf32> -> vector<32x128xf32>
      %c0_80 = arith.constant 0 : index
      %c0_81 = arith.constant 0 : index
      %203 = vector.load %arg8[%c0_80, %c0_81] : memref<1x128xf32, #tpu.memory_space<vmem>>, vector<1x128xf32>
      %204 = vector.broadcast %203 : vector<1x128xf32> to vector<32x128xf32>
      %205 = arith.addf %202, %204 : vector<32x128xf32>
      %c0_82 = arith.constant 0 : index
      %c0_83 = arith.constant 0 : index
      %206 = vector.load %arg9[%c0_82, %c0_83] : memref<32x128xf32, #tpu.memory_space<vmem>>, vector<32x128xf32>
      tpu.vector_store %arg9[%c0_82, %c0_83], %205 {strides = array<i32>} : memref<32x128xf32, #tpu.memory_space<vmem>>, vector<32x128xf32>,
    } else {
    }
    return
  }
  func.func @transform_0(%arg0: i32) -> (i32, i32) {
    %c0_i32 = arith.constant 0 : i32
    %c0_i32_0 = arith.constant 0 : i32
    %c0_i32_1 = arith.constant 0 : i32
    return %c0_i32, %c0_i32_0 : i32, i32
  }
  func.func @transform_1(%arg0: i32) -> (i32, i32, i32) {
    %c0_i32 = arith.constant 0 : i32
    %c0_i32_0 = arith.constant 0 : i32
    %c0_i32_1 = arith.constant 0 : i32
    return %arg0, %c0_i32, %c0_i32_0 : i32, i32, i32
  }
  func.func @transform_2(%arg0: i32) -> (i32, i32, i32) {
    %c0_i32 = arith.constant 0 : i32
    %c0_i32_0 = arith.constant 0 : i32
    %c0_i32_1 = arith.constant 0 : i32
    return %arg0, %c0_i32, %c0_i32_0 : i32, i32, i32
  }
  func.func @transform_3(%arg0: i32) -> (i32, i32, i32) {
    %c0_i32 = arith.constant 0 : i32
    %c0_i32_0 = arith.constant 0 : i32
    %c0_i32_1 = arith.constant 0 : i32
    return %arg0, %c0_i32, %c0_i32_0 : i32, i32, i32
  }
  func.func @transform_4(%arg0: i32) -> (i32, i32, i32) {
    %c0_i32 = arith.constant 0 : i32
    %c0_i32_0 = arith.constant 0 : i32
    %c0_i32_1 = arith.constant 0 : i32
    return %arg0, %c0_i32, %c0_i32_0 : i32, i32, i32
  }
  func.func @transform_5(%arg0: i32) -> (i32, i32, i32) {
    %c0_i32 = arith.constant 0 : i32
    %c0_i32_0 = arith.constant 0 : i32
    %c0_i32_1 = arith.constant 0 : i32
    return %arg0, %c0_i32, %c0_i32_0 : i32, i32, i32
  }
  func.func @transform_6(%arg0: i32) -> (i32, i32) {
    %c0_i32 = arith.constant 0 : i32
    %c0_i32_0 = arith.constant 0 : i32
    %c0_i32_1 = arith.constant 0 : i32
    return %c0_i32, %c0_i32_0 : i32, i32
  }
  func.func @transform_7(%arg0: i32) -> (i32, i32) {
    %c0_i32 = arith.constant 0 : i32
    %c0_i32_0 = arith.constant 0 : i32
    %c0_i32_1 = arith.constant 0 : i32
    return %c0_i32, %c0_i32_0 : i32, i32
  }
  func.func @transform_8(%arg0: i32) -> (i32, i32) {
    %c0_i32 = arith.constant 0 : i32
    %c0_i32_0 = arith.constant 0 : i32
    %c0_i32_1 = arith.constant 0 : i32
    return %c0_i32, %c0_i32_0 : i32, i32
  }
}

</mosaic_0001>

<bundles_post_ra>
// kernel: model_forward.1
= control target key start
LH: loop header
LB: loop body
LE: loop exit
PB: predicated region body
PF: predicated region fallthrough
CT: control target
= control target key end

     0   :  { %s4385_s0 = inlined_call_operand.vmem [shape: f32[32,128], index: 0, kind: input, shape index: {}]   ;;  %s4386_s1 = inlined_call_operand.vmem [shape: bf16[2,128,384], index: 1, kind: input, shape index: {}]   ;;  %s4387_s2 = inlined_call_operand.hbm [shape: bf16[2,128,128], index: 2, kind: input, shape index: {}]   ;;  %s4388_s3 = inlined_call_operand.hbm [shape: bf16[2,128,512], index: 3, kind: input, shape index: {}]   ;;  %s4389_s4 = inlined_call_operand.hbm [shape: bf16[2,512,128], index: 4, kind: input, shape index: {}]   ;;  %s4390_s5 = inlined_call_operand.hbm [shape: f32[2,8,512], index: 5, kind: input, shape index: {}]   ;;  %s4391_s6 = inlined_call_operand.hbm [shape: bf16[128,128], index: 6, kind: input, shape index: {}]   ;;  %s4392_s7 = inlined_call_operand.vmem [shape: f32[1,128], index: 7, kind: input, shape index: {}]   ;;  %s4393_s8 = inlined_call_operand.hbm [shape: f32[32,128], index: 8, kind: output, shape index: {}]  }
   0x1   :  { %4403 = sst [smem:[#allocation22_spill]] %s4388_s3 }
   0x2   :  { %4404 = sst [smem:[#allocation23_spill]] %s4391_s6 }
   0x3   :  { %4405 = sst [smem:[#allocation24_spill]] %s4393_s8 }
   0x4   :  { %13 = vsyncpa [#allocation5], 0 }
   0x5   :  { %15 = vsyncpa [#allocation5 + $0x1], 0 }
   0x6   :  { %16 = vsyncpa [#allocation8], 0 }
   0x7   :  { %18 = vsyncpa [#allocation8 + $0x1], 0 }
   0x8   :  { %19 = vsyncpa [#allocation11], 0 }
   0x9   :  { %21 = vsyncpa [#allocation11 + $0x1], 0 }
   0xa   :  { %22 = vsyncpa [#allocation6], 0  ;;  %s3636_s27 = smov 0   ;;  %s3638_s28 = smov 0  }
   0xb   :  { %s3640_s29 = smov 0   ;;  %s3642_s30 = smov 0  }
   0xc LB: > { %4406 = sst [smem:[#allocation19_spill]] %s3573_s29  ;;  %s3655_s9 = sadd.s32 4294967295, %s3577_s30   ;;  %s3577_s30 = sphi %s3642_s30, %s4425_s30   ;;  %s3573_s29 = sphi %s3640_s29, %s4427_s29   ;;  %s3569_s28 = sphi %s3638_s28, %s4429_s28   ;;  %s3565_s27 = sphi %s3636_s27, %s4428_s27  }
   0xd   : > { %p95_p0 = scmp.ne.s32.totalorder %s3569_s28, %s3565_s27  ;;  %p96_p1 = scmp.eq.s32.totalorder %s3655_s9, 0 }
   0xe   : > { %p2602_p2 = scmp.ge.s32.totalorder %s3577_s30, 1  ;;  %p247_p3 = scmp.lt.s32.totalorder %s3577_s30, 3 }
   0xf   : > { %p2603_p4 = scmp.ne.s32.totalorder %s3655_s9, 0  ;;  %p3664_p5 = por %p96_p1, %p95_p0 }
  0x10   : > { %s4408_s6 = sld [smem:[#allocation23_spill]]  ;;  %p3671_p6 = pnand %p2602_p2, %p247_p3 }
  0x11   : > { %s3579_s15 = smov [#allocation12]   ;;  %s3680_s17 = sadd.s32 1, %s3577_s30  }
  0x12   : > { %p3196_p7 = pneg %p3671_p6  ;;  %s263_s16 = sshll.u32 %s3579_s15, 4  ;;  %s264_s16 = int_to_ptr.vmem [resolvable:$true] %s263_s16 }
  0x13   : > { %4410 = sst [smem:[#allocation20_spill]] %s3680_s17  ;;  %s4394_s18 = smov 64  }
  0x14   : > { %p3197_p8 = pnand %p3196_p7, %p96_p1  ;;  %s4396_s19 = smov 4  }
  0x15   : > { %s79_s20 = ssub.s32 %s3577_s30, %s3680_s17  ;;  %s82_s21 = sadd.s32 1, %s3573_s29 }
  0x16   : > { %s261_s13 = sshll.u32 %s4408_s6, 4  ;;  %p80_p9 = scmp.eq.s32.totalorder %s79_s20, 0  ;;  %s262_s13 = int_to_ptr.hbm [resolvable:$true] %s261_s13 }
  0x17   : > { %3199 = dma.hbm_to_vmem [thread:$0]  (!%p3197_p8), %s262_s13, 1024, %s264_s16, [#allocation11], %s4394_s18, %s4394_s18, %s4396_s19  }
  0x18   : > { %p89_p10 = scmp.ne.s32.totalorder %s3573_s29, %s3569_s28  ;;  %p90_p11 = scmp.eq.s32.totalorder %s3577_s30, 0 }
  0x19   : > { %p3214_p12 = scmp.lt.s32.totalorder %s3577_s30, 2  ;;  %s3696_s23 = sand.u32 1, %s3573_s29  }
  0x1a   : > { %s3693_s22 = scalar_select %p80_p9, %s3573_s29, %s82_s21  }
  0x1b   : > { %p91_p13 = por %p90_p11, %p89_p10  ;;  %s4399_s24 = sand.u32 1, %s3577_s30  }
  0x1c   : > { %4411 = sst [smem:[#allocation21_spill]] %s3693_s22  ;;  %s4398_s25 = sshll.u32 %s3696_s23, 8 }
  0x1d   : > { %p3700_p0 = pnand %p3214_p12, %p91_p13  ;;  %s3064_s27 = sshll.u32 %s3577_s30, 8 }
  0x1e   : > { %s4413_s3 = sld [smem:[#allocation22_spill]]  ;;  %s314_s16 = scalar_lea.vmem [#allocation7], %s4398_s25 }
  0x1f   : > { %s322_s20 = sshll.u32 %s314_s16, 4  ;;  %s3712_s21 = scalar_lea.sflag [#allocation8], %s4399_s24  ;;  %s323_s20 = int_to_ptr.vmem [resolvable:$true] %s322_s20 }
  0x20   : > { %p3383_p3 = pneg %p3700_p0 }
  0x24   : > { %s319_s13 = scalar_lea.hbm %s4413_s3, %s3064_s27 }
  0x25   : > { %s320_s15 = sshll.u32 %s319_s13, 4  ;;  %s3386_s13 = scalar_lea.hbm %s4413_s3, 512  ;;  %s321_s15 = int_to_ptr.hbm [resolvable:$true] %s320_s15 }
  0x26   : > { %s3379_s18 = sshra.s32 %s321_s15, 4  ;;  %s3380_s18 = int_to_ptr.hbm [resolvable:$true] %s3379_s18 }
  0x27   : > { %s3381_s19 = scalar_lea.hbm %s3380_s18, 256  ;;  %p3387_p9 = scmp.lt.s32.totalorder %s3380_s18, %s4413_s3 }
  0x28   : > { %p3382_p2 = scmp.ne.s32.totalorder %s3380_s18, %s3381_s19  ;;  %p3388_p10 = scmp.lt.s32.totalorder %s3386_s13, %s3381_s19 }
  0x2a   : > { %p3384_p7 = pnand %p3383_p3, %p3382_p2  ;;  %p3389_p11 = por %p3388_p10, %p3387_p9 }
  0x2c   : > { %p3385_p8 = pneg %p3384_p7 }
  0x2e   : > { %p3390_p12 = pnand %p3389_p11, %p3385_p8 }
  0x30   : > { %3393 = shalt.err (!%p3390_p12)
}
  0x31   : > { %s3582_s24 = smov 256   ;;  %s3583_s6 = smov 16  }
  0x32   : > { %3206 = dma.hbm_to_vmem [thread:$0]  (!%p3700_p0), %s321_s15, 4096, %s323_s20, %s3712_s21, %s3582_s24, %s3582_s24, %s3583_s6  }
  0x33   : > { %s341_s22 = scalar_lea.hbm %s4389_s4, %s3064_s27  ;;  %s4414_s18 = sshll.u32 %s3696_s23, 8 }
  0x34   : > { %s342_s25 = sshll.u32 %s341_s22, 4  ;;  %s336_s19 = scalar_lea.vmem [#allocation9], %s4414_s18  ;;  %s3733_s25 = int_to_ptr.hbm [resolvable:$true] %s342_s25 }
  0x35   : > { %s344_s13 = sshll.u32 %s336_s19, 4  ;;  %s2605_s16 = sshll.u32 %s3696_s23, 6  ;;  %s3735_s13 = int_to_ptr.vmem [resolvable:$true] %s344_s13 }
  0x36   : > { %s3063_s3 = sshll.u32 %s3577_s30, 6  ;;  %s292_s6 = scalar_lea.vmem [#allocation4], %s2605_s16 }
  0x37   : > { %s297_s8 = scalar_lea.hbm %s4387_s2, %s3063_s3  ;;  %s300_s24 = sshll.u32 %s292_s6, 4  ;;  %s301_s24 = int_to_ptr.vmem [resolvable:$true] %s300_s24 }
  0x38   : > { %s298_s15 = sshll.u32 %s297_s8, 4  ;;  %s289_s22 = scalar_lea.sflag [#allocation5], %s3696_s23  ;;  %s299_s15 = int_to_ptr.hbm [resolvable:$true] %s298_s15 }
  0x39   : > { %s3409_s27 = sshra.s32 %s299_s15, 4  ;;  %s3416_s18 = scalar_lea.hbm %s4387_s2, 128  ;;  %s3410_s27 = int_to_ptr.hbm [resolvable:$true] %s3409_s27 }
  0x3a   : > { %s3411_s20 = scalar_lea.hbm %s3410_s27, 64  ;;  %p3417_p8 = scmp.lt.s32.totalorder %s3410_s27, %s4387_s2 }
  0x3b   : > { %p3412_p13 = scmp.ne.s32.totalorder %s3410_s27, %s3411_s20  ;;  %p3418_p9 = scmp.lt.s32.totalorder %s3416_s18, %s3411_s20 }
  0x3d   : > { %p3414_p2 = pnand %p3412_p13, %p3383_p3  ;;  %p3419_p10 = por %p3418_p9, %p3417_p8 }
  0x3f   : > { %p3415_p7 = pneg %p3414_p2 }
  0x41   : > { %p3420_p11 = pnand %p3419_p10, %p3415_p7 }
  0x43   : > { %3423 = shalt.err (!%p3420_p11)
}
  0x44   : > { %s4415_s8 = smov 4   ;;  %s4416_s17 = smov 64  }
  0x45   : > { %3203 = dma.hbm_to_vmem [thread:$0]  (!%p3700_p0), %s299_s15, 1024, %s301_s24, %s289_s22, %s4416_s17, %s4416_s17, %s4415_s8  }
  0x46   : > { %s3439_s19 = sshra.s32 %s3733_s25, 4  ;;  %s3446_s20 = scalar_lea.hbm %s4389_s4, 512  ;;  %s3440_s19 = int_to_ptr.hbm [resolvable:$true] %s3439_s19 }
  0x47   : > { %s3441_s16 = scalar_lea.hbm %s3440_s19, 256  ;;  %p3447_p7 = scmp.lt.s32.totalorder %s3440_s19, %s4389_s4 }
  0x48   : > { %p3442_p12 = scmp.ne.s32.totalorder %s3440_s19, %s3441_s16  ;;  %p3448_p8 = scmp.lt.s32.totalorder %s3446_s20, %s3441_s16 }
  0x4a   : > { %p3444_p13 = pnand %p3442_p12, %p3383_p3  ;;  %p3449_p9 = por %p3448_p8, %p3447_p7 }
  0x4c   : > { %p3445_p2 = pneg %p3444_p13 }
  0x4e   : > { %p3450_p10 = pnand %p3449_p9, %p3445_p2 }
  0x50   : > { %3453 = shalt.err (!%p3450_p10)
}
  0x51   : > { %3209 = dma.hbm_to_vmem [thread:$0]  (!%p3700_p0), %s3733_s25, 4096, %s3735_s13, %s3712_s21, %s4416_s17, %s4416_s17, %s4415_s8  }
  0x52   : > { %s2614_s24 = sshll.u32 %s3696_s23, 5  ;;  %s3066_s15 = sshll.u32 %s3577_s30, 5 }
  0x53   : > { %s363_s29 = scalar_lea.hbm %s4390_s5, %s3066_s15  ;;  %s358_s19 = scalar_lea.vmem [#allocation10], %s2614_s24 }
  0x54   : > { %s365_s3 = sshll.u32 %s363_s29, 4  ;;  %s367_s16 = sshll.u32 %s358_s19, 4  ;;  %s366_s3 = int_to_ptr.hbm [resolvable:$true] %s365_s3  ;;  %s368_s16 = int_to_ptr.vmem [resolvable:$true] %s367_s16 }
  0x55   : > { %s4417_s6 = sand.u32 1, %s3577_s30   ;;  %s3469_s20 = sshra.s32 %s366_s3, 4  ;;  %s3470_s20 = int_to_ptr.hbm [resolvable:$true] %s3469_s20 }
  0x56   : > { %s355_s27 = scalar_lea.sflag [#allocation11], %s4417_s6  ;;  %s3471_s11 = scalar_lea.hbm %s3470_s20, 32 }
  0x57   : > { %p3472_p11 = scmp.ne.s32.totalorder %s3470_s20, %s3471_s11  ;;  %s3476_s25 = scalar_lea.hbm %s4390_s5, 64 }
  0x58   : > { %p3477_p2 = scmp.lt.s32.totalorder %s3470_s20, %s4390_s5  ;;  %p3478_p7 = scmp.lt.s32.totalorder %s3476_s25, %s3471_s11 }
  0x59   : > { %p3474_p12 = pnand %p3472_p11, %p3383_p3 }
  0x5a   : > { %p3479_p8 = por %p3478_p7, %p3477_p2 }
  0x5b   : > { %p3475_p13 = pneg %p3474_p12 }
  0x5d   : > { %p3480_p9 = pnand %p3479_p8, %p3475_p13 }
  0x5f   : > { %3483 = shalt.err (!%p3480_p9)
}
  0x60   : > { %3212 = dma.hbm_to_vmem [thread:$0]  (!%p3700_p0), %s366_s3, 512, %s368_s16, %s355_s27  }
  0x61   : > { %376 = sbr.rel (%p3671_p6) target bundleno = 2295 (0x8f7), region = 52  ;;  %s378_s30 = sand.u32 (!%p3671_p6), 1, %s3569_s28  }
  0x62   : > { %s2618_s17 = sshll.u32 (!%p3671_p6), %s378_s30, 6  ;;  %s379_s12 = scalar_lea.sflag (!%p3671_p6), [#allocation5], %s378_s30 }
  0x63   : > { %s3796_s24 = scalar_lea.vmem (!%p3671_p6), [#allocation4], %s2618_s17 }
  0x66   : > { %3544 = dma.done.wait (%p3664_p5), %s379_s12, 1024  }
  0x67   : > { %3546 = vsyncadd (%p3664_p5), %s379_s12, 4294966272  ;;  %s388_s15 = sand.u32 1, %s3655_s9   ;;  %s2619_s26 = sshll.u32 %s378_s30, 8 }
  0x68   : > { %s389_s22 = scalar_lea.sflag [#allocation8], %s388_s15  ;;  %s3803_s18 = scalar_lea.vmem [#allocation7], %s2619_s26 }
  0x69   : > { %3548 = dma.done.wait (%p3664_p5), %s389_s22, 8192  }
  0x6a   : > { %3550 = vsyncadd (%p3664_p5), %s389_s22, 4294959104  ;;  %s2621_s14 = sshll.u32 %s378_s30, 5  ;;  %s3809_s29 = scalar_lea.vmem [#allocation9], %s2619_s26 }
  0x6b   : > { %s409_s3 = scalar_lea.sflag [#allocation11], %s388_s15  ;;  %s3811_s19 = scalar_lea.vmem [#allocation10], %s2621_s14 }
  0x6c   : > { %3552 = dma.done.wait (%p3664_p5), %s409_s3, 512  }
  0x6d   : > { %3554 = vsyncadd (%p3664_p5), %s409_s3, 4294966784 }
  0x6e   : > { %3556 = dma.done.wait (%p96_p1), [#allocation11], 1024  }
  0x6f   : > { %3558 = vsyncadd (%p96_p1), [#allocation11], 4294966272  ;;  %p466_p6 = scmp.lt.s32.totalorder %s3655_s9, 1 }
  0x71   : > { %s467_s16 = scalar_select %p466_p6, %s3655_s9, 1 }
  0x72   : > { %475 = sbr.rel (%p2603_p4) target bundleno = 124 (0x7c), region = 76 }
  0x73   : > { %s3179_s6 = smul.u32 192, %s467_s16 }
  0x75   : > { %s3826_s11 = scalar_lea.vmem %s4386_s1, %s3179_s6 }
  0x77   : > { %v476_v0 = vld [vmem:[%s4385_s0] sm:$0xff]  ;;  %v477_v1 = vld [vmem:[%s4385_s0 + $0x8] sm:$0xff]  ;;  %v478_v2 = vld [vmem:[%s4385_s0 + $0x10] sm:$0xff] }
  0x78   : > { %480 = vst [vmem:[#allocation2 + $0x10] sm:$0xff] %v476_v0  ;;  %v479_v3 = vld [vmem:[%s4385_s0 + $0x18] sm:$0xff] }
  0x79   : > { %481 = vst [vmem:[#allocation2] sm:$0xff] %v477_v1 }
  0x7a   : > { %482 = vst [vmem:[#allocation2 + $0x18] sm:$0xff] %v478_v2 }
  0x7b   : > { %483 = vst [vmem:[#allocation2 + $0x8] sm:$0xff] %v479_v3 }
  0x7c PF: > { %v3584_v8 = vmov 128.0   ;;  %v2712_v31 = vld [vmem:[%s3826_s11 + $0xa8] sm:$0xf]  ;;  %v3089_v32 = vld [vmem:[%s3826_s11 + $0xb0] sm:$0xf0]  ;;  %vm839_vm13 = vcmask 261120  }
  0x7d   : > { %3262 = vrcp.f32 %v3584_v8  ;;  %v3088_v33 = vld [vmem:[%s3826_s11 + $0xac] sm:$0xf]  ;;  %v2713_v34 = vor.u32 %v3089_v32, %v2712_v31  ;;  %v2714_v35 = vld [vmem:[%s3826_s11 + $0xb4] sm:$0xf0]  ;;  %v2720_v36 = vld [vmem:[%s3826_s11 + $0xb0] sm:$0xf] }
  0x7e   : > { %v3090_v37 = vld [vmem:[%s3826_s11 + $0xb8] sm:$0xf0]  ;;  %v2717_v38 = vor.u32 %v3088_v33, %v2714_v35  ;;  %v2700_v40 = vld [vmem:[%s3826_s11 + $0x90] sm:$0xf]  ;;  %v3085_v42 = vld [vmem:[%s3826_s11 + $0x94] sm:$0xf] }
  0x7f   : > { %v484_v5 = vld [vmem:[#allocation2 + $0x10] sm:$0xff]  ;;  %v2721_v39 = vor.u32 %v3090_v37, %v2720_v36  ;;  %753 = vmatpush.bf16.msra.mxu0 %v2713_v34  ;;  %v3086_v41 = vld [vmem:[%s3826_s11 + $0x98] sm:$0xf0]  ;;  %v2702_v44 = vld [vmem:[%s3826_s11 + $0x9c] sm:$0xf0]  ;;  %s3585_s12 = smov 96  }
  0x80   : > { %496 = vadd.xlane.f32.xlu0 %v484_v5  ;;  %v485_v7 = vld [vmem:[#allocation2] sm:$0xff]  ;;  %772 = vmatpush.bf16.msra.mxu1 %v2717_v38  ;;  %v2701_v43 = vor.u32 %v3086_v41, %v2700_v40  ;;  %v2708_v45 = vld [vmem:[%s3826_s11 + $0x98] sm:$0xf]  ;;  %v2705_v47 = vor.u32 %v3085_v42, %v2702_v44  ;;  %v3082_v51 = vld [vmem:[%s3826_s11 + $0x7c] sm:$0xf]  ;;  %s3586_s15 = smov 64  }
  0x81   : > { %v486_v4 = vld [vmem:[#allocation2 + $0x18] sm:$0xff]  ;;  %791 = vmatpush.bf16.msra.mxu2 %v2721_v39  ;;  %v3087_v46 = vld [vmem:[%s3826_s11 + $0xa0] sm:$0xf0]  ;;  %v2690_v53 = vld [vmem:[%s3826_s11 + $0x84] sm:$0xf0]  ;;  %s3587_s26 = smov 32  }
  0x82   : > { %500 = vadd.xlane.f32.xlu1 %v486_v4  ;;  %v487_v6 = vld [vmem:[#allocation2 + $0x8] sm:$0xff]  ;;  %v2709_v48 = vor.u32 %v3087_v46, %v2708_v45  ;;  %v2688_v49 = vld [vmem:[%s3826_s11 + $0x78] sm:$0xf]  ;;  %v3083_v50 = vld [vmem:[%s3826_s11 + $0x80] sm:$0xf0]  ;;  %v2693_v56 = vor.u32 %v3082_v51, %v2690_v53  ;;  %vm898_vm15 = vcmask 130048  }
  0x83   : > { %v3263_v9 = vpop.eup %3262  ;;  %754 = vmatpush.bf16.msra.mxu0 %v2701_v43  ;;  %v2689_v52 = vor.u32 %v3083_v50, %v2688_v49  ;;  %v2696_v54 = vld [vmem:[%s3826_s11 + $0x80] sm:$0xf]  ;;  %v3084_v55 = vld [vmem:[%s3826_s11 + $0x88] sm:$0xf0]  ;;  %v3079_v60 = vld [vmem:[%s3826_s11 + $0x64] sm:$0xf] }
  0x84   : > { %v505_v10 = vmul.f32 128.0, %v3263_v9  ;;  %vm509_vm0 = vweird.f32 %v3263_v9  ;;  %773 = vmatpush.bf16.msra.mxu1 %v2705_v47  ;;  %v2697_v57 = vor.u32 %v3084_v55, %v2696_v54  ;;  %v2676_v58 = vld [vmem:[%s3826_s11 + $0x60] sm:$0xf]  ;;  %v3080_v59 = vld [vmem:[%s3826_s11 + $0x68] sm:$0xf0]  ;;  %p3026_p1 = scmp.ne.s32.totalorder %s3655_s9, 1 }
  0x85   : > { %792 = vmatpush.bf16.msra.mxu2 %v2709_v48  ;;  %v2677_v61 = vor.u32 %v3080_v59, %v2676_v58  ;;  %v2678_v62 = vld [vmem:[%s3826_s11 + $0x6c] sm:$0xf0]  ;;  %v2684_v63 = vld [vmem:[%s3826_s11 + $0x68] sm:$0xf]  ;;  %v3081_v0 = vld [vmem:[%s3826_s11 + $0x70] sm:$0xf0] }
  0x86   : > { %v506_v11 = vsub.f32 1.0, %v505_v10  ;;  %v2681_v1 = vor.u32 %v3079_v60, %v2678_v62  ;;  %v2685_v2 = vor.u32 %v3081_v0, %v2684_v63  ;;  %v2664_v3 = vld [vmem:[%s3826_s11 + $0x48] sm:$0xf]  ;;  %v2672_v8 = vld [vmem:[%s3826_s11 + $0x50] sm:$0xf] }
  0x87   : > { %755 = vmatpush.bf16.msra.mxu0 %v2689_v52  ;;  %v2648_v31 = vld [vmem:[%s3826_s11 + $0x20] sm:$0xf]  ;;  %v3072_v32 = vld [vmem:[%s3826_s11 + $0x28] sm:$0xf0]  ;;  %v3067_v38 = vld [vmem:[%s3826_s11 + $0x4] sm:$0xf] }
  0x88   : > { %498 = vadd.xlane.f32.xlu0 %v485_v7  ;;  %v507_v12 = vmul.f32 %v3263_v9, %v506_v11  ;;  %774 = vmatpush.bf16.msra.mxu1 %v2693_v56  ;;  %v2649_v35 = vor.u32 %v3072_v32, %v2648_v31  ;;  %v2628_v36 = vld [vmem:[%s3826_s11] sm:$0xf]  ;;  %v3068_v37 = vld [vmem:[%s3826_s11 + $0x8] sm:$0xf0]  ;;  %v2630_v42 = vld [vmem:[%s3826_s11 + $0xc] sm:$0xf0] }
  0x89   : > { %793 = vmatpush.bf16.msra.mxu2 %v2697_v57  ;;  %v2629_v41 = vor.u32 %v3068_v37, %v2628_v36  ;;  %v2636_v43 = vld [vmem:[%s3826_s11 + $0x8] sm:$0xf]  ;;  %v3069_v44 = vld [vmem:[%s3826_s11 + $0x10] sm:$0xf0]  ;;  %v2633_v45 = vor.u32 %v3067_v38, %v2630_v42 }
  0x8a   : > { %502 = vadd.xlane.f32.xlu1 %v487_v6  ;;  %v508_v13 = vadd.f32 %v3263_v9, %v507_v12  ;;  %v2652_v12 = vld [vmem:[%s3826_s11 + $0x30] sm:$0xf]  ;;  %v2637_v46 = vor.u32 %v3069_v44, %v2636_v43 }
  0x8b   : > { %756 = vmatpush.bf16.msra.mxu0 %v2677_v61 }
  0x8c   : > { %v3842_v14 = vsel %vm509_vm0, %v3263_v9, %v508_v13  ;;  %775 = vmatpush.bf16.msra.mxu1 %v2681_v1  ;;  %v3078_v9 = vld [vmem:[%s3826_s11 + $0x58] sm:$0xf0] }
  0x8d   : > { %794 = vmatpush.bf16.msra.mxu2 %v2685_v2  ;;  %v2673_v11 = vor.u32 %v3078_v9, %v2672_v8  ;;  %v3074_v13 = vld [vmem:[%s3826_s11 + $0x38] sm:$0xf0] }
  0x91   : > { %795 = vmatpush.bf16.msra.mxu2 %v2673_v11 }
  0xf3   : > { %v497_v16 = vpop.xlane.xlu0 %496 }
  0xf4   : > { %v511_v18 = vmul.f32 %v3842_v14, %v497_v16  ;;  %v2653_v16 = vor.u32 %v3074_v13, %v2652_v12 }
  0xf5   : > { %v501_v15 = vpop.xlane.xlu1 %500 }
  0xf6   : > { %v513_v17 = vmul.f32 %v3842_v14, %v501_v15  ;;  %v3848_v20 = vsub.f32 %v484_v5, %v511_v18  ;;  %v3076_v5 = vld [vmem:[%s3826_s11 + $0x4c] sm:$0xf]  ;;  %v3073_v15 = vld [vmem:[%s3826_s11 + $0x34] sm:$0xf]  ;;  %v2660_v18 = vld [vmem:[%s3826_s11 + $0x38] sm:$0xf] }
  0xf8   : > { %v3846_v19 = vsub.f32 %v486_v4, %v513_v17  ;;  %v519_v22 = vmul.f32 %v3848_v20, %v3848_v20  ;;  %v3077_v4 = vld [vmem:[%s3826_s11 + $0x50] sm:$0xf0]  ;;  %v2654_v17 = vld [vmem:[%s3826_s11 + $0x3c] sm:$0xf0] }
  0xfa   : > { %v521_v21 = vmul.f32 %v3846_v19, %v3846_v19  ;;  %523 = vadd.xlane.f32.xlu2 %v519_v22  ;;  %v2657_v22 = vor.u32 %v3073_v15, %v2654_v17  ;;  %v488_v15 = vld [vmem:[%s3811_s19] ss:$0 sm:$0xff] }
  0xfb   : > { %v499_v24 = vpop.xlane.xlu0 %498 }
  0xfc   : > { %527 = vadd.xlane.f32.xlu0 %v521_v21  ;;  %v512_v26 = vmul.f32 %v3842_v14, %v499_v24  ;;  %v3075_v21 = vld [vmem:[%s3826_s11 + $0x40] sm:$0xf0]  ;;  %v2640_v24 = vld [vmem:[%s3826_s11 + $0x18] sm:$0xf] }
  0xfd   : > { %v503_v23 = vpop.xlane.xlu1 %502 }
  0xfe   : > { %v514_v25 = vmul.f32 %v3842_v14, %v503_v23  ;;  %v3858_v28 = vsub.f32 %v485_v7, %v512_v26  ;;  %v2666_v7 = vld [vmem:[%s3826_s11 + $0x54] sm:$0xf0]  ;;  %v2661_v23 = vor.u32 %v3075_v21, %v2660_v18  ;;  %v3070_v26 = vld [vmem:[%s3826_s11 + $0x1c] sm:$0xf] }
  0xff   : > { %v2669_v10 = vor.u32 %v3076_v5, %v2666_v7 }
 0x100   : > { %v3856_v27 = vsub.f32 %v487_v6, %v514_v25  ;;  %v520_v30 = vmul.f32 %v3858_v28, %v3858_v28  ;;  %v2665_v6 = vor.u32 %v3077_v4, %v2664_v3  ;;  %796 = vmatpush.bf16.msra.mxu2 %v2661_v23  ;;  %v3071_v25 = vld [vmem:[%s3826_s11 + $0x20] sm:$0xf0]  ;;  %v489_v23 = vld [vmem:[%s3811_s19 + $0x1] ss:$0 sm:$0xff] }
 0x101   : > { %776 = vmatpush.bf16.msra.mxu1 %v2669_v10 }
 0x102   : > { %v522_v29 = vmul.f32 %v3856_v27, %v3856_v27  ;;  %525 = vadd.xlane.f32.xlu2 %v520_v30  ;;  %757 = vmatpush.bf16.msra.mxu0 %v2665_v6  ;;  %v2642_v30 = vld [vmem:[%s3826_s11 + $0x24] sm:$0xf0] }
 0x103   : > { %v2645_v34 = vor.u32 %v3070_v26, %v2642_v30 }
 0x104   : > { %529 = vadd.xlane.f32.xlu1 %v522_v29  ;;  %v2641_v29 = vor.u32 %v3071_v25, %v2640_v24  ;;  %797 = vmatpush.bf16.msra.mxu2 %v2649_v35 }
 0x105   : > { %777 = vmatpush.bf16.msra.mxu1 %v2657_v22 }
 0x106   : > { %758 = vmatpush.bf16.msra.mxu0 %v2653_v16 }
 0x108   : > { %798 = vmatpush.bf16.msra.mxu2 %v2637_v46 }
 0x109   : > { %778 = vmatpush.bf16.msra.mxu1 %v2645_v34 }
 0x10a   : > { %759 = vmatpush.bf16.msra.mxu0 %v2641_v29 }
 0x10d   : > { %779 = vmatpush.bf16.msra.mxu1 %v2633_v45 }
 0x10e   : > { %760 = vmatpush.bf16.msra.mxu0 %v2629_v41 }
 0x16d   : > { %v524_v33 = vpop.xlane.xlu2 %523 }
 0x16e   : > { %v531_v39 = vmul.f32 %v524_v33, %v3842_v14 }
 0x16f   : > { %v528_v40 = vpop.xlane.xlu0 %527 }
 0x170   : > { %v535_v47 = vadd.f32 1e-05, %v531_v39  ;;  %v533_v48 = vmul.f32 %v528_v40, %v3842_v14 }
 0x172   : > { %3264 = vrsqrt.f32 %v535_v47  ;;  %v537_v49 = vadd.f32 1e-05, %v533_v48  ;;  %vm545_vm2 = vweird.f32 %v535_v47 }
 0x174   : > { %3266 = vrsqrt.f32 %v537_v49  ;;  %vm565_vm9 = vweird.f32 %v537_v49 }
 0x175   : > { %v526_v51 = vpop.xlane.xlu2 %525 }
 0x176   : > { %v532_v53 = vmul.f32 %v526_v51, %v3842_v14 }
 0x177   : > { %v530_v50 = vpop.xlane.xlu1 %529 }
 0x178   : > { %v534_v52 = vmul.f32 %v530_v50, %v3842_v14  ;;  %v3265_v54 = vpop.eup %3264  ;;  %v536_v56 = vadd.f32 1e-05, %v532_v53 }
 0x179   : > { %v540_v57 = vmul.f32 %v3265_v54, %v535_v47  ;;  %vm546_vm1 = vweird.f32 %v3265_v54 }
 0x17a   : > { %v538_v55 = vadd.f32 1e-05, %v534_v52  ;;  %v3267_v60 = vpop.eup %3266  ;;  %vm547_vm3 = vmor %vm545_vm2, %vm546_vm1  ;;  %vm555_vm5 = vweird.f32 %v536_v56  ;;  %vm1177_vm1 = vcmask 523520   ;;  %vm1352_vm2 = vcmask 785920  }
 0x17b   : > { %v541_v58 = vmul.f32 %v3265_v54, %v540_v57  ;;  %v560_v2 = vmul.f32 %v3267_v60, %v537_v49  ;;  %vm566_vm10 = vweird.f32 %v3267_v60 }
 0x17c   : > { %3268 = vrsqrt.f32 %v538_v55  ;;  %vm575_vm7 = vweird.f32 %v538_v55  ;;  %vm567_vm12 = vmor %vm565_vm9, %vm566_vm10 }
 0x17d   : > { %3270 = vrsqrt.f32 %v536_v56  ;;  %v542_v59 = vmul.f32 0.5, %v541_v58  ;;  %v561_v7 = vmul.f32 %v3267_v60, %v560_v2 }
 0x17f   : > { %v543_v61 = vsub.f32 1.5, %v542_v59  ;;  %v562_v12 = vmul.f32 0.5, %v561_v7 }
 0x181   : > { %v544_v1 = vmul.f32 %v3265_v54, %v543_v61  ;;  %v563_v22 = vsub.f32 1.5, %v562_v12 }
 0x182   : > { %v3269_v62 = vpop.eup %3268 }
 0x183   : > { %v3271_v63 = vpop.eup %3270  ;;  %v570_v0 = vmul.f32 %v3269_v62, %v538_v55  ;;  %v548_v6 = vsel %vm547_vm3, %v3265_v54, %v544_v1  ;;  %vm576_vm8 = vweird.f32 %v3269_v62  ;;  %v564_v29 = vmul.f32 %v3267_v60, %v563_v22 }
 0x184   : > { %v550_v3 = vmul.f32 %v3271_v63, %v536_v56  ;;  %vm556_vm4 = vweird.f32 %v3271_v63  ;;  %v579_v11 = vmul.f32 %v548_v6, %v3848_v20  ;;  %vm577_vm11 = vmor %vm575_vm7, %vm576_vm8  ;;  %vm1527_vm3 = vcmask 1048320  }
 0x185   : > { %v571_v4 = vmul.f32 %v3269_v62, %v570_v0  ;;  %vm557_vm6 = vmor %vm555_vm5, %vm556_vm4  ;;  %v568_v32 = vsel %vm567_vm12, %v3267_v60, %v564_v29 }
 0x186   : > { %v551_v5 = vmul.f32 %v3271_v63, %v550_v3  ;;  %v583_v21 = vmul.f32 %v579_v11, %v488_v15  ;;  %v581_v33 = vmul.f32 %v568_v32, %v3846_v19 }
 0x187   : > { %v572_v9 = vmul.f32 0.5, %v571_v4 }
 0x188   : > { %v552_v8 = vmul.f32 0.5, %v551_v5  ;;  %v587_v20 = vadd.f32 %v583_v21, %v489_v23  ;;  %v585_v35 = vmul.f32 %v581_v33, %v488_v15 }
 0x189   : > { %v573_v16 = vsub.f32 1.5, %v572_v9 }
 0x18a   : > { %v553_v10 = vsub.f32 1.5, %v552_v8  ;;  %v589_v37 = vadd.f32 %v585_v35, %v489_v23 }
 0x18b   : > { %v574_v25 = vmul.f32 %v3269_v62, %v573_v16 }
 0x18c   : > { %v554_v13 = vmul.f32 %v3271_v63, %v553_v10 }
 0x18d   : > { %v578_v31 = vsel %vm577_vm11, %v3269_v62, %v574_v25 }
 0x18e   : > { %v558_v17 = vsel %vm557_vm6, %v3271_v63, %v554_v13 }
 0x18f   : > { %v580_v18 = vmul.f32 %v558_v17, %v3858_v28  ;;  %v582_v28 = vmul.f32 %v578_v31, %v3856_v27 }
 0x191   : > { %v584_v24 = vmul.f32 %v580_v18, %v488_v15  ;;  %v586_v34 = vmul.f32 %v582_v28, %v488_v15 }
 0x193   : > { %v588_v26 = vadd.f32 %v584_v24, %v489_v23  ;;  %v590_v36 = vadd.f32 %v586_v34, %v489_v23 }
 0x195   : > { %v591_v30 = vpack.c.bf16 %v588_v26, %v587_v20  ;;  %v592_v38 = vpack.c.bf16 %v590_v36, %v589_v37 }
 0x197   : > { %761 = vmatmul.bf16.vlgmr.msra.gmra.mxu0 %v591_v30  ;;  %780 = vmatmul.bf16.vlgmr.msra.gmra.mxu1 %v591_v30 }
 0x198   : > { %799 = vmatmul.bf16.vlgmr.msra.gmra.mxu2 %v591_v30  ;;  %v826_v30 = vlaneseq }
 0x19a   : > { %v827_v31 = vshrl.u32 %v826_v30, 7  ;;  %v830_v32 = vand.u32 127, %v826_v30 }
 0x19c   : > { %vm3956_vm14 = vcmp.le.s32.totalorder %v830_v32, %v827_v31 }
 0x1a7   : > { %766 = vmatmul.bf16.gmra.mxu0 %v592_v38  ;;  %785 = vmatmul.bf16.gmra.mxu1 %v592_v38 }
 0x1a8   : > { %804 = vmatmul.bf16.gmra.mxu2 %v592_v38 }
 0x214   : > { %v762_v39 = vpop.f32.mrf.mxu0  ;;  %v781_v40 = vpop.f32.mrf.mxu1 }
 0x215   : > { %v810_v41 = vpack.c.bf16 %v781_v40, %v762_v39 }
 0x217   : > { %v822_v45 = vrot.slane %v810_v41, 4  ;;  %v833_v47 = vunpack.c.l.b16 %v810_v41  ;;  %v828_v41 = vadd.s32 8, %v827_v31 }
 0x219   : > { %v836_v19 = vunpack.c.l.b16 %v822_v45  ;;  %vm3965_vm0 = vcmp.le.s32.totalorder %v830_v32, %v828_v41 }
 0x21b   : > { %v800_v42 = vpop.f32.mrf.mxu2 }
 0x21c   : > { %v764_v43 = vpop.f32.mrf.mxu0  ;;  %v783_v44 = vpop.f32.mrf.mxu1  ;;  %v811_v63 = vpack.c.bf16 %v800_v42, %v800_v42 }
 0x21d   : > { %v812_v46 = vpack.c.bf16 %v783_v44, %v764_v43 }
 0x21e   : > { %v954_v7 = vunpack.c.l.b16 %v811_v63 }
 0x21f   : > { %v823_v27 = vrot.slane %v812_v46, 4  ;;  %v834_v48 = vunpack.c.l.b16 %v812_v46 }
 0x221   : > { %v835_v49 = vpack.c.b16 %v834_v48, %v833_v47  ;;  %v837_v50 = vunpack.c.l.b16 %v823_v27 }
 0x223   : > { %v838_v51 = vpack.c.b16 %v837_v50, %v836_v19  ;;  %v802_v52 = vpop.f32.mrf.mxu2  ;;  %1007 = vrot.lane.b32.xlu0 %v835_v49, %s3585_s12 }
 0x224   : > { %v767_v53 = vpop.f32.mrf.mxu0  ;;  %v786_v54 = vpop.f32.mrf.mxu1  ;;  %v813_v60 = vpack.c.bf16 %v802_v52, %v802_v52 }
 0x225   : > { %1009 = vrot.lane.b32.xlu2 %v838_v51, %s3585_s12  ;;  %v844_v55 = vsel %vm839_vm13, %v838_v51, 0  ;;  %v814_v56 = vpack.c.bf16 %v786_v54, %v767_v53 }
 0x226   : > { %853 = vmatpush.bf16.xpose.msra.mxu3 %v844_v55  ;;  %v955_v3 = vunpack.c.l.b16 %v813_v60 }
 0x227   : > { %v824_v61 = vrot.slane %v814_v56, 4  ;;  %v860_v0 = vunpack.c.l.b16 %v814_v56 }
 0x228   : > { %v3928_v10 = vpack.c.b16 %v955_v3, %v954_v7 }
 0x229   : > { %v863_v4 = vunpack.c.l.b16 %v824_v61 }
 0x22b   : > { %v805_v57 = vpop.f32.mrf.mxu2 }
 0x22c   : > { %v769_v58 = vpop.f32.mrf.mxu0  ;;  %v788_v59 = vpop.f32.mrf.mxu1  ;;  %v815_v13 = vpack.c.bf16 %v805_v57, %v805_v57 }
 0x22d   : > { %v816_v62 = vpack.c.bf16 %v788_v59, %v769_v58  ;;  %1184 = vrot.lane.b32.xlu2 %v838_v51, %s3586_s15  ;;  %2722 = vmatmul.msk.bf16.vlgmr.msra.gmra.mxu3 %vm839_vm13, %v835_v49 }
 0x22e   : > { %v982_v16 = vunpack.c.l.b16 %v815_v13 }
 0x22f   : > { %v825_v1 = vrot.slane %v816_v62, 4  ;;  %v861_v2 = vunpack.c.l.b16 %v816_v62 }
 0x231   : > { %v862_v5 = vpack.c.b16 %v861_v2, %v860_v0  ;;  %v864_v6 = vunpack.c.l.b16 %v825_v1 }
 0x233   : > { %v865_v8 = vpack.c.b16 %v864_v6, %v863_v4  ;;  %v807_v9 = vpop.f32.mrf.mxu2  ;;  %1031 = vrot.lane.b32.xlu0 %v862_v5, %s3585_s12 }
 0x234   : > { %v817_v11 = vpack.c.bf16 %v807_v9, %v807_v9 }
 0x235   : > { %1182 = vrot.lane.b32.xlu2 %v835_v49, %s3586_s15  ;;  %1033 = vrot.lane.b32.xlu1 %v865_v8, %s3585_s12  ;;  %v870_v12 = vsel %vm839_vm13, %v865_v8, 0 }
 0x236   : > { %879 = vmatpush.bf16.xpose.msrb.mxu3 %v870_v12  ;;  %v983_v15 = vunpack.c.l.b16 %v817_v11 }
 0x238   : > { %v3935_v17 = vpack.c.b16 %v983_v15, %v982_v16 }
 0x23b   : > { %1359 = vrot.lane.b32.xlu0 %v838_v51, %s3587_s26 }
 0x23d   : > { %1206 = vrot.lane.b32.xlu2 %v862_v5, %s3586_s15  ;;  %1208 = vrot.lane.b32.xlu1 %v865_v8, %s3586_s15 }
 0x23e   : > { %968 = vmatpush.bf16.msra.mxu3 %v3928_v10 }
 0x23f   : > { %2723 = vmatmul.msk.bf16.vlgmr.msrb.gmra.mxu3 %vm839_vm13, %v862_v5 }
 0x242   : > { %996 = vmatpush.bf16.msrb.mxu3 %v3935_v17 }
 0x243   : > { %1383 = vrot.lane.b32.xlu0 %v865_v8, %s3587_s26 }
 0x245   : > { %1381 = vrot.lane.b32.xlu2 %v862_v5, %s3587_s26  ;;  %1357 = vrot.lane.b32.xlu1 %v835_v49, %s3587_s26 }
 0x24b   : > { %1116 = vrot.lane.b32.xlu0 %v3928_v10, %s3585_s12 }
 0x24d   : > { %1141 = vrot.lane.b32.xlu2 %v3935_v17, %s3585_s12 }
 0x27f   : > { %v1010_v18 = vpop.permute.xlu2 %1009 }
 0x280   : > { %v1015_v21 = vsel %vm839_vm13, %v1010_v18, 0 }
 0x281   : > { %1024 = vmatpush.bf16.xpose.msrb.mxu1 %v1015_v21 }
 0x287   : > { %v1185_v22 = vpop.permute.xlu2 %1184 }
 0x288   : > { %v1190_v23 = vsel %vm839_vm13, %v1185_v22, 0 }
 0x289   : > { %1199 = vmatpush.bf16.xpose.msrb.mxu0 %v1190_v23 }
 0x28f   : > { %v1183_v24 = vpop.permute.xlu2 %1182 }
 0x290   : > { %2730 = vmatmul.msk.bf16.vlgmr.msrb.gmra.mxu0 %vm839_vm13, %v1183_v24 }
 0x295   : > { %v1008_v25 = vpop.permute.xlu0 %1007 }
 0x296   : > { %2726 = vmatmul.msk.bf16.vlgmr.msrb.gmra.mxu1 %vm839_vm13, %v1008_v25 }
 0x297   : > { %v1207_v49 = vpop.permute.xlu2 %1206 }
 0x29f   : > { %v1382_v58 = vpop.permute.xlu2 %1381 }
 0x2a5   : > { %v1032_v20 = vpop.permute.xlu0 %1031 }
 0x2a7   : > { %v1034_v26 = vpop.permute.xlu1 %1033  ;;  %v4011_v23 = vpop.permute.xlu2 %1141 }
 0x2a8   : > { %v1039_v29 = vsel %vm839_vm13, %v1034_v26, 0 }
 0x2a9   : > { %1048 = vmatpush.bf16.xpose.msra.mxu1 %v1039_v29 }
 0x2ad   : > { %v1360_v28 = vpop.permute.xlu0 %1359 }
 0x2ae   : > { %v1365_v33 = vsel %vm839_vm13, %v1360_v28, 0 }
 0x2af   : > { %v1209_v34 = vpop.permute.xlu1 %1208  ;;  %1374 = vmatpush.bf16.xpose.msra.mxu0 %v1365_v33 }
 0x2b0   : > { %v1214_v35 = vsel %vm839_vm13, %v1209_v34, 0  ;;  %v855_v36 = vpop.f32.mrf.mxu3  ;;  %2727 = vmatmul.msk.bf16.vlgmr.msra.gmra.mxu1 %vm839_vm13, %v1032_v20 }
 0x2b1   : > { %v886_v38 = vmul.f32 0.088388346, %v855_v36  ;;  %1223 = vmatpush.bf16.xpose.msrb.mxu1 %v1214_v35 }
 0x2b3   : > { %v894_v39 = vsel %vm3956_vm14, %v886_v38, -1e+30 }
 0x2b4   : > { %v899_v40 = vsel %vm898_vm15, %v894_v39, -inf }
 0x2b5   : > { %900 = vmax.xlane.f32.xlu1 %v899_v40  ;;  %v1384_v42 = vpop.permute.xlu0 %1383 }
 0x2b6   : > { %v1389_v43 = vsel %vm839_vm13, %v1384_v42, 0 }
 0x2b7   : > { %v1358_v44 = vpop.permute.xlu1 %1357 }
 0x2b8   : > { %v857_v45 = vpop.f32.mrf.mxu3  ;;  %2734 = vmatmul.msk.bf16.vlgmr.msra.gmra.mxu0 %vm839_vm13, %v1358_v44 }
 0x2b9   : > { %1398 = vmatpush.bf16.xpose.msra.mxu1 %v1389_v43  ;;  %v887_v47 = vmul.f32 0.088388346, %v857_v45 }
 0x2bb   : > { %v895_v27 = vsel %vm3965_vm0, %v887_v47, -1e+30 }
 0x2bc   : > { %v902_v48 = vsel %vm898_vm15, %v895_v27, -inf }
 0x2bd   : > { %903 = vmax.xlane.f32.xlu0 %v902_v48  ;;  %v1117_v19 = vpop.permute.xlu0 %1116 }
 0x2be   : > { %1129 = vmatpush.bf16.msrb.mxu2 %v1117_v19 }
 0x2c0   : > { %2731 = vmatmul.msk.bf16.vlgmr.msrb.gmra.mxu1 %vm839_vm13, %v1207_v49 }
 0x2c2   : > { %v881_v50 = vpop.f32.mrf.mxu3 }
 0x2c3   : > { %v888_v51 = vmul.f32 0.088388346, %v881_v50 }
 0x2c5   : > { %v896_v52 = vsel %vm3956_vm14, %v888_v51, -1e+30 }
 0x2c6   : > { %v905_v53 = vsel %vm898_vm15, %v896_v52, -inf }
 0x2c7   : > { %906 = vmax.xlane.f32.xlu2 %v905_v53 }
 0x2ca   : > { %v883_v54 = vpop.f32.mrf.mxu3 }
 0x2cb   : > { %v889_v55 = vmul.f32 0.088388346, %v883_v54 }
 0x2cd   : > { %v3978_v56 = vsel %vm3965_vm0, %v889_v55, -1e+30 }
 0x2ce   : > { %v908_v57 = vsel %vm898_vm15, %v3978_v56, -inf }
 0x2cf   : > { %909 = vmax.xlane.f32.xlu1 %v908_v57 }
 0x2d0   : > { %2735 = vmatmul.msk.bf16.vlgmr.msra.gmra.mxu1 %vm839_vm13, %v1382_v58 }
 0x30d   : > { %v1201_v59 = vpop.f32.mrf.mxu0 }
 0x30e   : > { %v1230_v60 = vmul.f32 0.088388346, %v1201_v59 }
 0x310   : > { %v3985_v61 = vsel %vm3956_vm14, %v1230_v60, -1e+30 }
 0x311   : > { %v1238_v62 = vsel %vm898_vm15, %v3985_v61, -inf }
 0x312   : > { %1239 = vmax.xlane.f32.xlu2 %v1238_v62 }
 0x313   : > { %v1026_v63 = vpop.f32.mrf.mxu1 }
 0x314   : > { %v1055_v0 = vmul.f32 0.088388346, %v1026_v63 }
 0x315   : > { %v1203_v1 = vpop.f32.mrf.mxu0 }
 0x316   : > { %v1231_v2 = vmul.f32 0.088388346, %v1203_v1  ;;  %v3991_v3 = vsel %vm3956_vm14, %v1055_v0, -1e+30 }
 0x317   : > { %v1063_v4 = vsel %vm898_vm15, %v3991_v3, -inf }
 0x318   : > { %1064 = vmax.xlane.f32.xlu0 %v1063_v4  ;;  %v3997_v5 = vsel %vm3965_vm0, %v1231_v2, -1e+30 }
 0x319   : > { %v1241_v6 = vsel %vm898_vm15, %v3997_v5, -inf }
 0x31a   : > { %1242 = vmax.xlane.f32.xlu1 %v1241_v6 }
 0x31b   : > { %v1028_v7 = vpop.f32.mrf.mxu1 }
 0x31c   : > { %v1056_v8 = vmul.f32 0.088388346, %v1028_v7 }
 0x31e   : > { %v4003_v9 = vsel %vm3965_vm0, %v1056_v8, -1e+30 }
 0x31f   : > { %v1066_v11 = vsel %vm898_vm15, %v4003_v9, -inf }
 0x320   : > { %1067 = vmax.xlane.f32.xlu2 %v1066_v11 }
 0x328   : > { %v901_v12 = vpop.xlane.xlu1 %900 }
 0x329   : > { %v911_v13 = vsub.f32 %v894_v39, %v901_v12 }
 0x32b   : > { %v915_v15 = vmul.f32 1.442695, %v911_v13 }
 0x32d   : > { %3272 = vpow2.f32 %v915_v15  ;;  %v1050_v16 = vpop.f32.mrf.mxu1 }
 0x32e   : > { %v1057_v18 = vmul.f32 0.088388346, %v1050_v16 }
 0x330   : > { %v904_v21 = vpop.xlane.xlu0 %903  ;;  %v4009_v22 = vsel %vm3956_vm14, %v1057_v18, -1e+30 }
 0x331   : > { %v912_v24 = vsub.f32 %v895_v27, %v904_v21  ;;  %v1069_v25 = vsel %vm898_vm15, %v4009_v22, -inf }
 0x332   : > { %1070 = vmax.xlane.f32.xlu1 %v1069_v25 }
 0x333   : > { %v4015_v20 = vpop.eup %3272  ;;  %v917_v26 = vmul.f32 1.442695, %v912_v24 }
 0x334   : > { %v923_v29 = vsel %vm898_vm15, %v4015_v20, 0.0 }
 0x335   : > { %924 = vadd.xlane.f32.xlu2 %v923_v29  ;;  %v1052_v30 = vpop.f32.mrf.mxu1  ;;  %v1376_v31 = vpop.f32.mrf.mxu0  ;;  %3274 = vpow2.f32 %v917_v26 }
 0x336   : > { %v1058_v32 = vmul.f32 0.088388346, %v1052_v30  ;;  %v1405_v28 = vmul.f32 0.088388346, %v1376_v31 }
 0x338   : > { %v4021_v33 = vsel %vm3965_vm0, %v1058_v32, -1e+30  ;;  %v4025_v34 = vsel %vm3956_vm14, %v1405_v28, -1e+30 }
 0x339   : > { %v1072_v36 = vsel %vm898_vm15, %v4021_v33, -inf  ;;  %v1413_v38 = vsel %vm898_vm15, %v4025_v34, -inf }
 0x33a   : > { %v907_v35 = vpop.xlane.xlu2 %906  ;;  %1073 = vmax.xlane.f32.xlu0 %v1072_v36  ;;  %1414 = vmax.xlane.f32.xlu1 %v1413_v38 }
 0x33b   : > { %v913_v39 = vsub.f32 %v896_v52, %v907_v35  ;;  %v4031_v43 = vpop.eup %3274 }
 0x33c   : > { %v926_v48 = vsel %vm898_vm15, %v4031_v43, 0.0 }
 0x33d   : > { %v919_v40 = vmul.f32 1.442695, %v913_v39  ;;  %v1225_v41 = vpop.f32.mrf.mxu1  ;;  %v1378_v42 = vpop.f32.mrf.mxu0 }
 0x33e   : > { %v1406_v44 = vmul.f32 0.088388346, %v1378_v42  ;;  %v1232_v19 = vmul.f32 0.088388346, %v1225_v41 }
 0x33f   : > { %3276 = vpow2.f32 %v919_v40 }
 0x340   : > { %v4035_v45 = vsel %vm3965_vm0, %v1406_v44, -1e+30  ;;  %v4044_v53 = vsel %vm3956_vm14, %v1232_v19, -1e+30 }
 0x341   : > { %v1416_v27 = vsel %vm898_vm15, %v4035_v45, -inf }
 0x342   : > { %v910_v47 = vpop.xlane.xlu1 %909  ;;  %1417 = vmax.xlane.f32.xlu0 %v1416_v27  ;;  %927 = vadd.xlane.f32.xlu1 %v926_v48 }
 0x343   : > { %v914_v49 = vsub.f32 %v3978_v56, %v910_v47  ;;  %v1244_v56 = vsel %vm898_vm15, %v4044_v53, -inf }
 0x345   : > { %v921_v50 = vmul.f32 1.442695, %v914_v49  ;;  %v1227_v51 = vpop.f32.mrf.mxu1  ;;  %v4046_v54 = vpop.eup %3276 }
 0x346   : > { %v1233_v52 = vmul.f32 0.088388346, %v1227_v51  ;;  %v929_v58 = vsel %vm898_vm15, %v4046_v54, 0.0 }
 0x347   : > { %3278 = vpow2.f32 %v921_v50 }
 0x348   : > { %v4050_v55 = vsel %vm3965_vm0, %v1233_v52, -1e+30 }
 0x349   : > { %v1247_v57 = vsel %vm898_vm15, %v4050_v55, -inf }
 0x34a   : > { %1248 = vmax.xlane.f32.xlu2 %v1247_v57  ;;  %1245 = vmax.xlane.f32.xlu0 %v1244_v56 }
 0x34b   : > { %930 = vadd.xlane.f32.xlu1 %v929_v58 }
 0x34d   : > { %v1400_v59 = vpop.f32.mrf.mxu1  ;;  %v4058_v60 = vpop.eup %3278 }
 0x34e   : > { %v932_v62 = vsel %vm898_vm15, %v4058_v60, 0.0  ;;  %v1407_v63 = vmul.f32 0.088388346, %v1400_v59 }
 0x350   : > { %v4064_v2 = vsel %vm3956_vm14, %v1407_v63, -1e+30 }
 0x351   : > { %v1419_v6 = vsel %vm898_vm15, %v4064_v2, -inf }
 0x352   : > { %933 = vadd.xlane.f32.xlu0 %v932_v62 }
 0x355   : > { %v1402_v0 = vpop.f32.mrf.mxu1 }
 0x356   : > { %v1408_v1 = vmul.f32 0.088388346, %v1402_v0 }
 0x358   : > { %v4068_v4 = vsel %vm3965_vm0, %v1408_v1, -1e+30 }
 0x359   : > { %v1422_v7 = vsel %vm898_vm15, %v4068_v4, -inf }
 0x35a   : > { %1420 = vmax.xlane.f32.xlu0 %v1419_v6  ;;  %1423 = vmax.xlane.f32.xlu2 %v1422_v7 }
 0x36e   : > { %1291 = vrot.lane.b32.xlu0 %v3928_v10, %s3586_s15 }
 0x385   : > { %v1240_v8 = vpop.xlane.xlu2 %1239 }
 0x386   : > { %v1250_v12 = vsub.f32 %v3985_v61, %v1240_v8 }
 0x388   : > { %v1254_v13 = vmul.f32 1.442695, %v1250_v12 }
 0x38b   : > { %v1065_v11 = vpop.xlane.xlu0 %1064 }
 0x38c   : > { %v1075_v37 = vsub.f32 %v3991_v3, %v1065_v11 }
 0x38d   : > { %v1243_v15 = vpop.xlane.xlu1 %1242 }
 0x38e   : > { %v1079_v46 = vmul.f32 1.442695, %v1075_v37  ;;  %v1251_v24 = vsub.f32 %v3997_v5, %v1243_v15 }
 0x390   : > { %3280 = vpow2.f32 %v1079_v46  ;;  %v1256_v3 = vmul.f32 1.442695, %v1251_v24 }
 0x391   : > { %3282 = vpow2.f32 %v1254_v13 }
 0x393   : > { %v1068_v16 = vpop.xlane.xlu2 %1067 }
 0x394   : > { %v1076_v18 = vsub.f32 %v4003_v9, %v1068_v16 }
 0x396   : > { %v4079_v21 = vpop.eup %3280  ;;  %v1081_v25 = vmul.f32 1.442695, %v1076_v18 }
 0x397   : > { %v1087_v26 = vsel %vm898_vm15, %v4079_v21, 0.0  ;;  %v4084_v61 = vpop.eup %3282 }
 0x398   : > { %3284 = vpow2.f32 %v1081_v25  ;;  %1088 = vadd.xlane.f32.xlu2 %v1087_v26  ;;  %v1262_v30 = vsel %vm898_vm15, %v4084_v61, 0.0 }
 0x399   : > { %3286 = vpow2.f32 %v1256_v3 }
 0x39e   : > { %v4086_v29 = vpop.eup %3284 }
 0x39f   : > { %v1090_v9 = vsel %vm898_vm15, %v4086_v29, 0.0  ;;  %v4092_v5 = vpop.eup %3286 }
 0x3a0   : > { %1091 = vadd.xlane.f32.xlu1 %v1090_v9  ;;  %1263 = vadd.xlane.f32.xlu2 %v1262_v30  ;;  %v1265_v28 = vsel %vm898_vm15, %v4092_v5, 0.0 }
 0x3a5   : > { %v1071_v31 = vpop.xlane.xlu1 %1070 }
 0x3a6   : > { %v1077_v32 = vsub.f32 %v4009_v22, %v1071_v31 }
 0x3a8   : > { %v1083_v35 = vmul.f32 1.442695, %v1077_v32  ;;  %1266 = vadd.xlane.f32.xlu1 %v1265_v28  ;;  %v925_v36 = vpop.xlane.xlu2 %924 }
 0x3aa   : > { %3288 = vpow2.f32 %v1083_v35 }
 0x3ab   : > { %3290 = vrcp.f32 %v925_v36 }
 0x3ad   : > { %v1415_v38 = vpop.xlane.xlu1 %1414  ;;  %v1074_v39 = vpop.xlane.xlu0 %1073 }
 0x3ae   : > { %v1078_v40 = vsub.f32 %v4021_v33, %v1074_v39  ;;  %v1425_v1 = vsub.f32 %v4025_v34, %v1415_v38 }
 0x3b0   : > { %v4098_v41 = vpop.eup %3288  ;;  %v1085_v42 = vmul.f32 1.442695, %v1078_v40  ;;  %v1429_v8 = vmul.f32 1.442695, %v1425_v1 }
 0x3b1   : > { %v1093_v44 = vsel %vm898_vm15, %v4098_v41, 0.0  ;;  %v3291_v27 = vpop.eup %3290 }
 0x3b2   : > { %1094 = vadd.xlane.f32.xlu2 %v1093_v44  ;;  %3292 = vpow2.f32 %v1085_v42  ;;  %v939_v19 = vmul.f32 %v3291_v27, %v4015_v20 }
 0x3b4   : > { %v943_v50 = vpack.c.bf16 %v939_v19, %v939_v19 }
 0x3b5   : > { %v928_v22 = vpop.xlane.xlu1 %927  ;;  %v1418_v47 = vpop.xlane.xlu0 %1417 }
 0x3b6   : > { %3294 = vrcp.f32 %v928_v22  ;;  %v949_v20 = vunpack.c.l.b16 %v943_v50  ;;  %v1426_v37 = vsub.f32 %v4035_v45, %v1418_v47 }
 0x3b8   : > { %v4102_v48 = vpop.eup %3292  ;;  %v1431_v13 = vmul.f32 1.442695, %v1426_v37 }
 0x3b9   : > { %v1096_v33 = vsel %vm898_vm15, %v4102_v48, 0.0 }
 0x3ba   : > { %1097 = vadd.xlane.f32.xlu1 %v1096_v33 }
 0x3bc   : > { %v3295_v49 = vpop.eup %3294 }
 0x3bd   : > { %v940_v51 = vmul.f32 %v3295_v49, %v4031_v43  ;;  %v1249_v52 = vpop.xlane.xlu2 %1248  ;;  %v1246_v57 = vpop.xlane.xlu0 %1245 }
 0x3be   : > { %v1253_v56 = vsub.f32 %v4050_v55, %v1249_v52  ;;  %v931_v58 = vpop.xlane.xlu1 %930  ;;  %v1252_v59 = vsub.f32 %v4044_v53, %v1246_v57 }
 0x3bf   : > { %v944_v62 = vpack.c.bf16 %v940_v51, %v940_v51  ;;  %3296 = vrcp.f32 %v931_v58 }
 0x3c0   : > { %v1260_v63 = vmul.f32 1.442695, %v1253_v56  ;;  %v1258_v0 = vmul.f32 1.442695, %v1252_v59 }
 0x3c1   : > { %v950_v6 = vunpack.c.l.b16 %v944_v62 }
 0x3c2   : > { %3298 = vpow2.f32 %v1260_v63 }
 0x3c3   : > { %v951_v7 = vpack.c.b16 %v950_v6, %v949_v20  ;;  %3300 = vpow2.f32 %v1258_v0 }
 0x3c5   : > { %2724 = vmatmul.msk.bf16.vlgmr.msra.gmra.mxu3 %vm898_vm15, %v951_v7  ;;  %v934_v43 = vpop.xlane.xlu0 %933  ;;  %v3297_v11 = vpop.eup %3296 }
 0x3c6   : > { %1154 = vmatpush.bf16.msra.mxu3 %v4011_v23  ;;  %3302 = vrcp.f32 %v934_v43  ;;  %v941_v34 = vmul.f32 %v3297_v11, %v4046_v54 }
 0x3c7   : > { %3304 = vpow2.f32 %v1429_v8 }
 0x3c8   : > { %v4113_v53 = vpop.eup %3298  ;;  %v945_v15 = vpack.c.bf16 %v941_v34, %v941_v34  ;;  %3306 = vpow2.f32 %v1431_v13 }
 0x3c9   : > { %v4115_v55 = vpop.eup %3300  ;;  %v1271_v12 = vsel %vm898_vm15, %v4113_v53, 0.0 }
 0x3ca   : > { %1272 = vadd.xlane.f32.xlu0 %v1271_v12  ;;  %1316 = vrot.lane.b32.xlu2 %v3935_v17, %s3586_s15  ;;  %v1268_v23 = vsel %vm898_vm15, %v4115_v55, 0.0  ;;  %v977_v26 = vunpack.c.l.b16 %v945_v15 }
 0x3cb   : > { %1269 = vadd.xlane.f32.xlu1 %v1268_v23 }
 0x3cc   : > { %v3303_v46 = vpop.eup %3302 }
 0x3cd   : > { %v942_v16 = vmul.f32 %v3303_v46, %v4058_v60  ;;  %v1424_v18 = vpop.xlane.xlu2 %1423  ;;  %v4127_v54 = vpop.eup %3304 }
 0x3ce   : > { %v1428_v45 = vsub.f32 %v4068_v4, %v1424_v18  ;;  %v1437_v9 = vsel %vm898_vm15, %v4127_v54, 0.0  ;;  %v4132_v31 = vpop.eup %3306  ;;  %v1421_v4 = vpop.xlane.xlu0 %1420 }
 0x3cf   : > { %v946_v24 = vpack.c.bf16 %v942_v16, %v942_v16  ;;  %v1440_v28 = vsel %vm898_vm15, %v4132_v31, 0.0  ;;  %v1427_v36 = vsub.f32 %v4064_v2, %v1421_v4 }
 0x3d0   : > { %v1435_v25 = vmul.f32 1.442695, %v1428_v45 }
 0x3d1   : > { %v978_v3 = vunpack.c.l.b16 %v946_v24  ;;  %v1433_v38 = vmul.f32 1.442695, %v1427_v36 }
 0x3d2   : > { %3308 = vpow2.f32 %v1435_v25 }
 0x3d3   : > { %v979_v30 = vpack.c.b16 %v978_v3, %v977_v26  ;;  %1438 = vadd.xlane.f32.xlu1 %v1437_v9  ;;  %3310 = vpow2.f32 %v1433_v38 }
 0x3d5   : > { %2725 = vmatmul.msk.bf16.vlgmr.msrb.gmra.mxu3 %vm898_vm15, %v979_v30 }
 0x3d8   : > { %v4134_v60 = vpop.eup %3308 }
 0x3d9   : > { %v1446_v32 = vsel %vm898_vm15, %v4134_v60, 0.0  ;;  %v4141_v39 = vpop.eup %3310 }
 0x3da   : > { %1447 = vadd.xlane.f32.xlu0 %v1446_v32  ;;  %v1443_v40 = vsel %vm898_vm15, %v4141_v39, 0.0 }
 0x3db   : > { %1441 = vadd.xlane.f32.xlu1 %v1440_v28 }
 0x3e0   : > { %v1292_v35 = vpop.permute.xlu0 %1291 }
 0x3e1   : > { %1304 = vmatpush.bf16.msra.mxu2 %v1292_v35 }
 0x3f3   : > { %1444 = vadd.xlane.f32.xlu2 %v1443_v40 }
 0x3f4   : > { %1466 = vrot.lane.b32.xlu1 %v3928_v10, %s3587_s26 }
 0x3fc   : > { %1491 = vrot.lane.b32.xlu1 %v3935_v17, %s3587_s26 }
 0x40b   : > { %v1089_v42 = vpop.xlane.xlu2 %1088 }
 0x40c   : > { %3312 = vrcp.f32 %v1089_v42 }
 0x412   : > { %v3313_v22 = vpop.eup %3312 }
 0x413   : > { %v1092_v44 = vpop.xlane.xlu1 %1091  ;;  %v1103_v2 = vmul.f32 %v3313_v22, %v4079_v21  ;;  %v1264_v33 = vpop.xlane.xlu2 %1263 }
 0x414   : > { %3314 = vrcp.f32 %v1092_v44 }
 0x415   : > { %v1107_v27 = vpack.c.bf16 %v1103_v2, %v1103_v2 }
 0x417   : > { %v1113_v10 = vunpack.c.l.b16 %v1107_v27 }
 0x41a   : > { %v3315_v47 = vpop.eup %3314 }
 0x41b   : > { %v1104_v19 = vmul.f32 %v3315_v47, %v4086_v29  ;;  %v1267_v49 = vpop.xlane.xlu1 %1266 }
 0x41c   : > { %3316 = vrcp.f32 %v1267_v49 }
 0x41d   : > { %v1108_v50 = vpack.c.bf16 %v1104_v19, %v1104_v19  ;;  %3318 = vrcp.f32 %v1264_v33 }
 0x41f   : > { %v1114_v51 = vunpack.c.l.b16 %v1108_v50 }
 0x421   : > { %v1115_v52 = vpack.c.b16 %v1114_v51, %v1113_v10 }
 0x422   : > { %v3317_v17 = vpop.eup %3316 }
 0x423   : > { %2728 = vmatmul.msk.bf16.vlgmr.msrb.gmra.mxu2 %vm898_vm15, %v1115_v52  ;;  %v3319_v57 = vpop.eup %3318  ;;  %v1279_v56 = vmul.f32 %v3317_v17, %v4092_v5 }
 0x424   : > { %v1278_v21 = vmul.f32 %v3319_v57, %v4084_v61 }
 0x425   : > { %v1095_v58 = vpop.xlane.xlu2 %1094  ;;  %v1283_v59 = vpack.c.bf16 %v1279_v56, %v1279_v56 }
 0x426   : > { %3320 = vrcp.f32 %v1095_v58  ;;  %v1282_v29 = vpack.c.bf16 %v1278_v21, %v1278_v21 }
 0x427   : > { %v1289_v62 = vunpack.c.l.b16 %v1283_v59 }
 0x428   : > { %v1288_v1 = vunpack.c.l.b16 %v1282_v29 }
 0x42a   : > { %v1290_v6 = vpack.c.b16 %v1289_v62, %v1288_v1 }
 0x42c   : > { %v3321_v20 = vpop.eup %3320 }
 0x42d   : > { %v1317_v63 = vpop.permute.xlu2 %1316  ;;  %v1098_v0 = vpop.xlane.xlu1 %1097  ;;  %v1105_v7 = vmul.f32 %v3321_v20, %v4098_v41 }
 0x42e   : > { %1329 = vmatpush.bf16.msrb.mxu3 %v1317_v63  ;;  %3322 = vrcp.f32 %v1098_v0  ;;  %v3098_v0 = vld [vmem:[%s3796_s24 + $0x38] sm:$0xff] }
 0x42f   : > { %v1109_v5 = vpack.c.bf16 %v1105_v7, %v1105_v7  ;;  %1602 = vmatpush.bf16.msrb.mxu0 %v3098_v0  ;;  %v2886_v0 = vld [vmem:[%s3803_s18 + $0xf0] sm:$0xf0] }
 0x431   : > { %v1138_v11 = vunpack.c.l.b16 %v1109_v5  ;;  %v3097_v5 = vld [vmem:[%s3796_s24 + $0x30] sm:$0xff] }
 0x433   : > { %2732 = vmatmul.msk.bf16.vlgmr.msra.gmra.mxu2 %vm898_vm15, %v1290_v6  ;;  %1603 = vmatpush.bf16.msrb.mxu0 %v3097_v5  ;;  %v2894_v5 = vld [vmem:[%s3803_s18 + $0xf8] sm:$0xf0] }
 0x434   : > { %v3323_v8 = vpop.eup %3322 }
 0x435   : > { %v1106_v43 = vmul.f32 %v3323_v8, %v4102_v48 }
 0x437   : > { %v1110_v61 = vpack.c.bf16 %v1106_v43, %v1106_v43  ;;  %v3096_v43 = vld [vmem:[%s3796_s24 + $0x28] sm:$0xff] }
 0x438   : > { %1604 = vmatpush.bf16.msrb.mxu0 %v3096_v43 }
 0x439   : > { %v1139_v37 = vunpack.c.l.b16 %v1110_v61  ;;  %v3095_v61 = vld [vmem:[%s3796_s24 + $0x20] sm:$0xff] }
 0x43b   : > { %v1140_v34 = vpack.c.b16 %v1139_v37, %v1138_v11  ;;  %v3094_v11 = vld [vmem:[%s3796_s24 + $0x18] sm:$0xff]  ;;  %v3093_v37 = vld [vmem:[%s3796_s24 + $0x10] sm:$0xff] }
 0x43c   : > { %1605 = vmatpush.bf16.msrb.mxu0 %v3095_v61  ;;  %v2868_v61 = vld [vmem:[%s3803_s18 + $0xc0] sm:$0xf] }
 0x43d   : > { %v1273_v12 = vpop.xlane.xlu0 %1272  ;;  %2729 = vmatmul.msk.bf16.vlgmr.msra.gmra.mxu3 %vm898_vm15, %v1140_v34  ;;  %v3092_v34 = vld [vmem:[%s3796_s24 + $0x8] sm:$0xff] }
 0x43e   : > { %v1270_v23 = vpop.xlane.xlu1 %1269  ;;  %3324 = vrcp.f32 %v1273_v12  ;;  %v3091_v12 = vld [vmem:[%s3796_s24] sm:$0xff] }
 0x43f   : > { %3326 = vrcp.f32 %v1270_v23 }
 0x440   : > { %1606 = vmatpush.bf16.msrb.mxu0 %v3094_v11  ;;  %v3125_v11 = vld [vmem:[%s3803_s18 + $0xcc] sm:$0xf0] }
 0x444   : > { %v3325_v46 = vpop.eup %3324  ;;  %1607 = vmatpush.bf16.msrb.mxu0 %v3093_v37  ;;  %v3123_v37 = vld [vmem:[%s3803_s18 + $0xc4] sm:$0xf] }
 0x445   : > { %v3327_v13 = vpop.eup %3326  ;;  %v1281_v41 = vmul.f32 %v3325_v46, %v4113_v53 }
 0x446   : > { %v1280_v15 = vmul.f32 %v3327_v13, %v4115_v55  ;;  %v1439_v16 = vpop.xlane.xlu1 %1438 }
 0x447   : > { %v1285_v18 = vpack.c.bf16 %v1281_v41, %v1281_v41 }
 0x448   : > { %v1284_v45 = vpack.c.bf16 %v1280_v15, %v1280_v15  ;;  %v970_v48 = vpop.f32.mrf.mxu3  ;;  %1608 = vmatpush.bf16.msrb.mxu0 %v3092_v34  ;;  %v2869_v34 = vor.u32 %v3125_v11, %v2868_v61 }
 0x449   : > { %v1314_v24 = vunpack.c.l.b16 %v1285_v18  ;;  %1003 = vst.msk [vmem:[#allocation3] sm:$0xff] %vm839_vm13, %v970_v48 }
 0x44a   : > { %v1313_v25 = vunpack.c.l.b16 %v1284_v45 }
 0x44c   : > { %v1315_v26 = vpack.c.b16 %v1314_v24, %v1313_v25  ;;  %1609 = vmatpush.bf16.msrb.mxu0 %v3091_v12  ;;  %v2870_v12 = vld [vmem:[%s3803_s18 + $0xd0] sm:$0xf0] }
 0x44d   : > { %v1448_v28 = vpop.xlane.xlu0 %1447 }
 0x44e   : > { %2733 = vmatmul.msk.bf16.vlgmr.msrb.gmra.mxu3 %vm898_vm15, %v1315_v26  ;;  %v1442_v3 = vpop.xlane.xlu1 %1441 }
 0x44f   : > { %3328 = vrcp.f32 %v1442_v3 }
 0x450   : > { %v972_v9 = vpop.f32.mrf.mxu3  ;;  %3330 = vrcp.f32 %v1439_v16 }
 0x451   : > { %1004 = vst.msk [vmem:[#allocation3 + $0x8] sm:$0xff] %vm839_vm13, %v972_v9  ;;  %3332 = vrcp.f32 %v1448_v28  ;;  %v490_v9 = vld [vmem:[%s3811_s19 + $0x2] ss:$0 sm:$0xff] }
 0x455   : > { %v3329_v30 = vpop.eup %3328 }
 0x456   : > { %v3331_v55 = vpop.eup %3330  ;;  %v1454_v4 = vmul.f32 %v3329_v30, %v4132_v31 }
 0x457   : > { %v1453_v32 = vmul.f32 %v3331_v55, %v4127_v54  ;;  %v3333_v2 = vpop.eup %3332  ;;  %v3344_v55 = vld [vmem:[#allocation2 + $0x10] sm:$0xff] }
 0x458   : > { %v998_v53 = vpop.f32.mrf.mxu3  ;;  %v1458_v35 = vpack.c.bf16 %v1454_v4, %v1454_v4  ;;  %v1456_v27 = vmul.f32 %v3333_v2, %v4134_v60 }
 0x459   : > { %1005 = vst.msk [vmem:[#allocation3 + $0x10] sm:$0xff] %vm839_vm13, %v998_v53  ;;  %v1457_v38 = vpack.c.bf16 %v1453_v32, %v1453_v32 }
 0x45a   : > { %v1464_v40 = vunpack.c.l.b16 %v1458_v35  ;;  %v1460_v31 = vpack.c.bf16 %v1456_v27, %v1456_v27  ;;  %v3345_v35 = vld [vmem:[#allocation2] sm:$0xff] }
 0x45b   : > { %v1463_v42 = vunpack.c.l.b16 %v1457_v38 }
 0x45c   : > { %v1489_v50 = vunpack.c.l.b16 %v1460_v31 }
 0x45d   : > { %v1465_v47 = vpack.c.b16 %v1464_v40, %v1463_v42  ;;  %v3346_v42 = vld [vmem:[#allocation2 + $0x18] sm:$0xff] }
 0x460   : > { %v1000_v36 = vpop.f32.mrf.mxu3 }
 0x461   : > { %1006 = vst.msk [vmem:[#allocation3 + $0x18] sm:$0xff] %vm839_vm13, %v1000_v36 }
 0x466   : > { %v1467_v44 = vpop.permute.xlu1 %1466  ;;  %v1445_v22 = vpop.xlane.xlu2 %1444 }
 0x467   : > { %3334 = vrcp.f32 %v1445_v22  ;;  %1479 = vmatpush.bf16.msrb.mxu2 %v1467_v44 }
 0x46a   : > { %2736 = vmatmul.msk.bf16.vlgmr.msrb.gmra.mxu2 %vm898_vm15, %v1465_v47  ;;  %v3347_v47 = vld [vmem:[#allocation2 + $0x8] sm:$0xff] }
 0x46d   : > { %v3335_v54 = vpop.eup %3334 }
 0x46e   : > { %v1455_v19 = vmul.f32 %v3335_v54, %v4141_v39  ;;  %v1492_v33 = vpop.permute.xlu1 %1491 }
 0x46f   : > { %1504 = vmatpush.bf16.msra.mxu3 %v1492_v33 }
 0x470   : > { %v1459_v49 = vpack.c.bf16 %v1455_v19, %v1455_v19 }
 0x472   : > { %v1488_v10 = vunpack.c.l.b16 %v1459_v49 }
 0x474   : > { %v1490_v51 = vpack.c.b16 %v1489_v50, %v1488_v10 }
 0x476   : > { %2737 = vmatmul.msk.bf16.vlgmr.msra.gmra.mxu3 %vm898_vm15, %v1490_v51 }
 0x4a6   : > { %v1131_v52 = vpop.f32.mrf.mxu2 }
 0x4a7   : > { %1165 = vrot.lane.b32.xlu0 %v1131_v52, %s3587_s26 }
 0x4ae   : > { %v1133_v17 = vpop.f32.mrf.mxu2 }
 0x4af   : > { %1167 = vrot.lane.b32.xlu1 %v1133_v17, %s3587_s26 }
 0x4b6   : > { %v1306_v60 = vpop.f32.mrf.mxu2 }
 0x4b7   : > { %1340 = vrot.lane.b32.xlu1 %v1306_v60, %s3586_s15 }
 0x4be   : > { %v1308_v57 = vpop.f32.mrf.mxu2 }
 0x4bf   : > { %1342 = vrot.lane.b32.xlu2 %v1308_v57, %s3586_s15 }
 0x4c0   : > { %v1156_v39 = vpop.f32.mrf.mxu3 }
 0x4c1   : > { %1169 = vrot.lane.b32.xlu1 %v1156_v39, %s3587_s26 }
 0x4c8   : > { %v1158_v56 = vpop.f32.mrf.mxu3 }
 0x4d1   : > { %v1331_v58 = vpop.f32.mrf.mxu3 }
 0x4d9   : > { %v1333_v59 = vpop.f32.mrf.mxu3 }
 0x4ed   : > { %v1481_v21 = vpop.f32.mrf.mxu2 }
 0x4ee   : > { %1515 = vrot.lane.b32.xlu1 %v1481_v21, %s3585_s12 }
 0x4f5   : > { %v1483_v29 = vpop.f32.mrf.mxu2 }
 0x4f6   : > { %1517 = vrot.lane.b32.xlu0 %v1483_v29, %s3585_s12  ;;  %1344 = vrot.lane.b32.xlu1 %v1331_v58, %s3586_s15  ;;  %v3129_v29 = vld [vmem:[%s3803_s18 + $0xec] sm:$0xf0] }
 0x4f9   : > { %v1506_v62 = vpop.f32.mrf.mxu3 }
 0x4fa   : > { %1519 = vrot.lane.b32.xlu2 %v1506_v62, %s3585_s12  ;;  %v3127_v62 = vld [vmem:[%s3803_s18 + $0xe4] sm:$0xf] }
 0x4fe   : > { %1171 = vrot.lane.b32.xlu0 %v1158_v56, %s3587_s26 }
 0x501   : > { %v1508_v63 = vpop.f32.mrf.mxu3 }
 0x502   : > { %1521 = vrot.lane.b32.xlu1 %v1508_v63, %s3585_s12 }
 0x506   : > { %1346 = vrot.lane.b32.xlu0 %v1333_v59, %s3586_s15  ;;  %v2884_v59 = vld [vmem:[%s3803_s18 + $0xe0] sm:$0xf] }
 0x507   : > { %v2885_v63 = vor.u32 %v3129_v29, %v2884_v59 }
 0x509   : > { %1916 = vmatpush.bf16.msrb.mxu1 %v2885_v63  ;;  %v2830_v63 = vld [vmem:[%s3803_s18 + $0x78] sm:$0xf0] }
 0x50d   : > { %1917 = vmatpush.bf16.msrb.mxu1 %v2869_v34  ;;  %v2814_v34 = vld [vmem:[%s3803_s18 + $0x58] sm:$0xf0] }
 0x519   : > { %v1166_v20 = vpop.permute.xlu0 %1165  ;;  %v1343_v6 = vpop.permute.xlu2 %1342 }
 0x51a   : > { %1178 = vst.msk [vmem:[#allocation3] sm:$0xff] %vm1177_vm1, %v1166_v20  ;;  %v2892_v20 = vld [vmem:[%s3803_s18 + $0xe8] sm:$0xf] }
 0x521   : > { %v1168_v1 = vpop.permute.xlu1 %1167 }
 0x522   : > { %1179 = vst.msk [vmem:[#allocation3 + $0x8] sm:$0xff] %vm1177_vm1, %v1168_v1  ;;  %v3130_v1 = vld [vmem:[%s3803_s18 + $0xf4] sm:$0xf0] }
 0x523   : > { %1354 = vst.msk [vmem:[#allocation3 + $0x8] sm:$0xff] %vm1352_vm2, %v1343_v6  ;;  %v2889_v6 = vor.u32 %v3127_v62, %v2886_v0  ;;  %v3112_v62 = vld [vmem:[%s3803_s18 + $0x6c] sm:$0xf] }
 0x524   : > { %v2833_v0 = vor.u32 %v3112_v62, %v2830_v63 }
 0x525   : > { %1935 = vmatpush.bf16.msra.mxu2 %v2889_v6  ;;  %v3107_v6 = vld [vmem:[%s3803_s18 + $0x44] sm:$0xf] }
 0x529   : > { %v1341_v7 = vpop.permute.xlu1 %1340 }
 0x52a   : > { %1353 = vst.msk [vmem:[#allocation3] sm:$0xff] %vm1352_vm2, %v1341_v7  ;;  %v2893_v7 = vor.u32 %v3130_v1, %v2892_v20  ;;  %v2804_v20 = vld [vmem:[%s3803_s18 + $0x40] sm:$0xf]  ;;  %v3109_v1 = vld [vmem:[%s3803_s18 + $0x4c] sm:$0xf0] }
 0x52c   : > { %1954 = vmatpush.bf16.msrb.mxu3 %v2893_v7  ;;  %v2805_v7 = vor.u32 %v3109_v1, %v2804_v20 }
 0x533   : > { %v1170_v8 = vpop.permute.xlu1 %1169 }
 0x534   : > { %1180 = vst.msk [vmem:[#allocation3 + $0x10] sm:$0xff] %vm1177_vm1, %v1170_v8  ;;  %v3128_v8 = vld [vmem:[%s3803_s18 + $0xec] sm:$0xf] }
 0x535   : > { %v2897_v43 = vor.u32 %v3128_v8, %v2894_v5  ;;  %v2806_v8 = vld [vmem:[%s3803_s18 + $0x50] sm:$0xf0]  ;;  %v2812_v5 = vld [vmem:[%s3803_s18 + $0x48] sm:$0xf] }
 0x536   : > { %v2809_v61 = vor.u32 %v3107_v6, %v2806_v8  ;;  %v3162_v8 = vld [vmem:[%s3809_s29 + $0xf8] sm:$0xff] }
 0x537   : > { %1973 = vmatpush.bf16.msra.mxu0 %v2897_v43  ;;  %v3110_v43 = vld [vmem:[%s3803_s18 + $0x54] sm:$0xf0] }
 0x538   : > { %v2813_v11 = vor.u32 %v3110_v43, %v2812_v5  ;;  %v3146_v43 = vld [vmem:[%s3809_s29 + $0x78] sm:$0xff] }
 0x554   : > { %v1520_v41 = vpop.permute.xlu2 %1519 }
 0x560   : > { %v1516_v23 = vpop.permute.xlu1 %1515 }
 0x561   : > { %1528 = vst.msk [vmem:[#allocation3] sm:$0xff] %vm1527_vm3, %v1516_v23  ;;  %v2876_v23 = vld [vmem:[%s3803_s18 + $0xc8] sm:$0xf] }
 0x568   : > { %v1345_v46 = vpop.permute.xlu1 %1344  ;;  %v1518_v13 = vpop.permute.xlu0 %1517  ;;  %v1532_v16 = vld [vmem:[#allocation3] sm:$0xff] }
 0x569   : > { %1355 = vst.msk [vmem:[#allocation3 + $0x10] sm:$0xff] %vm1352_vm2, %v1345_v46  ;;  %v3126_v46 = vld [vmem:[%s3803_s18 + $0xd4] sm:$0xf0] }
 0x56a   : > { %1530 = vst.msk [vmem:[#allocation3 + $0x10] sm:$0xff] %vm1527_vm3, %v1520_v41  ;;  %v2877_v41 = vor.u32 %v3126_v46, %v2876_v23  ;;  %v2788_v23 = vld [vmem:[%s3803_s18 + $0x20] sm:$0xf]  ;;  %v3105_v46 = vld [vmem:[%s3803_s18 + $0x2c] sm:$0xf0] }
 0x56b   : > { %1529 = vst.msk [vmem:[#allocation3 + $0x8] sm:$0xff] %vm1527_vm3, %v1518_v13  ;;  %v2873_v13 = vor.u32 %v3123_v37, %v2870_v12  ;;  %v3108_v37 = vld [vmem:[%s3803_s18 + $0x4c] sm:$0xf] }
 0x56c   : > { %1955 = vmatpush.bf16.msrb.mxu3 %v2877_v41  ;;  %v2817_v12 = vor.u32 %v3108_v37, %v2814_v34  ;;  %v2789_v41 = vor.u32 %v3105_v46, %v2788_v23  ;;  %v3137_v37 = vld [vmem:[%s3809_s29 + $0x30] sm:$0xff] }
 0x56d   : > { %1936 = vmatpush.bf16.msra.mxu2 %v2873_v13  ;;  %v3103_v13 = vld [vmem:[%s3803_s18 + $0x24] sm:$0xf]  ;;  %v3161_v34 = vld [vmem:[%s3809_s29 + $0xf0] sm:$0xff] }
 0x570   : > { %v1172_v15 = vpop.permute.xlu0 %1171 }
 0x571   : > { %1181 = vst.msk [vmem:[#allocation3 + $0x18] sm:$0xff] %vm1177_vm1, %v1172_v15  ;;  %v1534_v25 = vld [vmem:[#allocation3 + $0x10] sm:$0xff]  ;;  %v3124_v15 = vld [vmem:[%s3803_s18 + $0xcc] sm:$0xf] }
 0x572   : > { %v1533_v18 = vld [vmem:[#allocation3 + $0x8] sm:$0xff] }
 0x573   : > { %v1536_v45 = vpack.c.bf16 %v1533_v18, %v1532_v16  ;;  %v2878_v16 = vld [vmem:[%s3803_s18 + $0xd8] sm:$0xf0] }
 0x574   : > { %v1522_v24 = vpop.permute.xlu1 %1521  ;;  %v2881_v18 = vor.u32 %v3124_v15, %v2878_v16  ;;  %v2790_v15 = vld [vmem:[%s3803_s18 + $0x30] sm:$0xf0]  ;;  %v2796_v16 = vld [vmem:[%s3803_s18 + $0x28] sm:$0xf] }
 0x575   : > { %1610 = vmatmul.bf16.vlgmr.msrb.gmra.mxu0 %v1536_v45  ;;  %v2852_v45 = vld [vmem:[%s3803_s18 + $0xa0] sm:$0xf] }
 0x576   : > { %1974 = vmatpush.bf16.msra.mxu0 %v2881_v18  ;;  %v3106_v18 = vld [vmem:[%s3803_s18 + $0x34] sm:$0xf0] }
 0x578   : > { %v1347_v48 = vpop.permute.xlu0 %1346 }
 0x579   : > { %1356 = vst.msk [vmem:[#allocation3 + $0x18] sm:$0xff] %vm1352_vm2, %v1347_v48  ;;  %v3121_v48 = vld [vmem:[%s3803_s18 + $0xac] sm:$0xf0] }
 0x57a   : > { %1531 = vst.msk [vmem:[#allocation3 + $0x18] sm:$0xff] %vm1527_vm3, %v1522_v24  ;;  %v3119_v24 = vld [vmem:[%s3803_s18 + $0xa4] sm:$0xf] }
 0x581   : > { %v1535_v26 = vld [vmem:[#allocation3 + $0x18] sm:$0xff] }
 0x582   : > { %v1537_v3 = vpack.c.bf16 %v1535_v26, %v1534_v25  ;;  %v2853_v25 = vor.u32 %v3121_v48, %v2852_v45  ;;  %v2854_v26 = vld [vmem:[%s3803_s18 + $0xb0] sm:$0xf0]  ;;  %v2793_v45 = vor.u32 %v3103_v13, %v2790_v15  ;;  %v2797_v48 = vor.u32 %v3106_v18, %v2796_v16  ;;  %v491_v16 = vld [vmem:[%s3811_s19 + $0x3] ss:$0 sm:$0xff] }
 0x583   : > { %v3145_v13 = vld [vmem:[%s3809_s29 + $0x70] sm:$0xff] }
 0x584   : > { %1918 = vmatpush.bf16.msrb.mxu1 %v2853_v25  ;;  %v2798_v25 = vld [vmem:[%s3803_s18 + $0x38] sm:$0xf0] }
 0x585   : > { %1615 = vmatmul.bf16.gmra.mxu0 %v1537_v3  ;;  %v2860_v3 = vld [vmem:[%s3803_s18 + $0xa8] sm:$0xf] }
 0x5f2   : > { %v1611_v53 = vpop.f32.mrf.mxu0 }
 0x5f3   : > { %v1612_v30 = vadd.f32 %v1611_v53, %v490_v9  ;;  %v2857_v53 = vor.u32 %v3119_v24, %v2854_v26  ;;  %v3104_v24 = vld [vmem:[%s3803_s18 + $0x2c] sm:$0xf] }
 0x5f5   : > { %v4204_v4 = vadd.f32 %v3344_v55, %v1612_v30  ;;  %v3120_v55 = vld [vmem:[%s3803_s18 + $0xac] sm:$0xf]  ;;  %1937 = vmatpush.bf16.msra.mxu2 %v2857_v53  ;;  %v2772_v53 = vld [vmem:[%s3803_s18] sm:$0xf] }
 0x5f7   : > { %1625 = vadd.xlane.f32.xlu0 %v4204_v4 }
 0x5fa   : > { %v1613_v32 = vpop.f32.mrf.mxu0 }
 0x5fb   : > { %v1614_v28 = vadd.f32 %v1613_v32, %v490_v9  ;;  %v2862_v32 = vld [vmem:[%s3803_s18 + $0xb8] sm:$0xf0] }
 0x5fd   : > { %v4207_v36 = vadd.f32 %v3345_v35, %v1614_v28  ;;  %v2865_v28 = vor.u32 %v3120_v55, %v2862_v32  ;;  %v2836_v35 = vld [vmem:[%s3803_s18 + $0x80] sm:$0xf]  ;;  %v3099_v55 = vld [vmem:[%s3803_s18 + $0x4] sm:$0xf] }
 0x5ff   : > { %1627 = vadd.xlane.f32.xlu2 %v4207_v36  ;;  %1975 = vmatpush.bf16.msra.mxu0 %v2865_v28  ;;  %v2774_v28 = vld [vmem:[%s3803_s18 + $0x10] sm:$0xf0] }
 0x602   : > { %v1616_v38 = vpop.f32.mrf.mxu0 }
 0x603   : > { %v1617_v40 = vadd.f32 %v1616_v38, %v490_v9  ;;  %v3117_v38 = vld [vmem:[%s3803_s18 + $0x8c] sm:$0xf0] }
 0x605   : > { %v4210_v44 = vadd.f32 %v3346_v42, %v1617_v40  ;;  %v3115_v40 = vld [vmem:[%s3803_s18 + $0x84] sm:$0xf]  ;;  %v2837_v42 = vor.u32 %v3117_v38, %v2836_v35  ;;  %v2780_v35 = vld [vmem:[%s3803_s18 + $0x8] sm:$0xf]  ;;  %v3102_v38 = vld [vmem:[%s3803_s18 + $0x14] sm:$0xf0] }
 0x607   : > { %1629 = vadd.xlane.f32.xlu1 %v4210_v44  ;;  %1919 = vmatpush.bf16.msrb.mxu1 %v2837_v42  ;;  %v2777_v42 = vor.u32 %v3099_v55, %v2774_v28  ;;  %v3159_v28 = vld [vmem:[%s3809_s29 + $0xe0] sm:$0xff] }
 0x60a   : > { %v1618_v22 = vpop.f32.mrf.mxu0 }
 0x60b   : > { %v1619_v2 = vadd.f32 %v1618_v22, %v490_v9  ;;  %v3122_v9 = vld [vmem:[%s3803_s18 + $0xb4] sm:$0xf0]  ;;  %v2838_v22 = vld [vmem:[%s3803_s18 + $0x90] sm:$0xf0] }
 0x60c   : > { %v2861_v30 = vor.u32 %v3122_v9, %v2860_v3  ;;  %v2801_v3 = vor.u32 %v3104_v24, %v2798_v25 }
 0x60d   : > { %v4213_v27 = vadd.f32 %v3347_v47, %v1619_v2  ;;  %v2844_v2 = vld [vmem:[%s3803_s18 + $0x88] sm:$0xf]  ;;  %v3118_v47 = vld [vmem:[%s3803_s18 + $0x94] sm:$0xf0] }
 0x60e   : > { %1956 = vmatpush.bf16.msrb.mxu3 %v2861_v30  ;;  %v3101_v30 = vld [vmem:[%s3803_s18 + $0xc] sm:$0xf0] }
 0x60f   : > { %1631 = vadd.xlane.f32.xlu0 %v4213_v27  ;;  %v2773_v32 = vor.u32 %v3101_v30, %v2772_v53  ;;  %v492_v53 = vld [vmem:[%s3811_s19 + $0x4] ss:$0 sm:$0xff] }
 0x66a   : > { %v1626_v54 = vpop.xlane.xlu0 %1625 }
 0x66b   : > { %v1633_v31 = vmul.f32 %v1626_v54, %v3842_v14  ;;  %v2841_v54 = vor.u32 %v3115_v40, %v2838_v22  ;;  %v2781_v22 = vor.u32 %v3102_v38, %v2780_v35 }
 0x66d   : > { %v4218_v19 = vsub.f32 %v4204_v4, %v1633_v31  ;;  %v2845_v31 = vor.u32 %v3118_v47, %v2844_v2  ;;  %1938 = vmatpush.bf16.msra.mxu2 %v2841_v54  ;;  %v3100_v2 = vld [vmem:[%s3803_s18 + $0xc] sm:$0xf]  ;;  %v2782_v47 = vld [vmem:[%s3803_s18 + $0x18] sm:$0xf0] }
 0x66e   : > { %v2785_v54 = vor.u32 %v3100_v2, %v2782_v47 }
 0x66f   : > { %v1641_v33 = vmul.f32 %v4218_v19, %v4218_v19  ;;  %1957 = vmatpush.bf16.msrb.mxu3 %v2845_v31 }
 0x671   : > { %1645 = vadd.xlane.f32.xlu2 %v1641_v33  ;;  %v3116_v33 = vld [vmem:[%s3803_s18 + $0x8c] sm:$0xf] }
 0x672   : > { %v1628_v49 = vpop.xlane.xlu2 %1627 }
 0x673   : > { %v1634_v50 = vmul.f32 %v1628_v49, %v3842_v14  ;;  %v2846_v49 = vld [vmem:[%s3803_s18 + $0x98] sm:$0xf0] }
 0x675   : > { %v4224_v10 = vsub.f32 %v4207_v36, %v1634_v50  ;;  %v2849_v50 = vor.u32 %v3116_v33, %v2846_v49 }
 0x677   : > { %v1642_v51 = vmul.f32 %v4224_v10, %v4224_v10  ;;  %1976 = vmatpush.bf16.msra.mxu0 %v2849_v50 }
 0x679   : > { %1647 = vadd.xlane.f32.xlu1 %v1642_v51  ;;  %v2820_v51 = vld [vmem:[%s3803_s18 + $0x60] sm:$0xf] }
 0x67a   : > { %v1630_v52 = vpop.xlane.xlu1 %1629 }
 0x67b   : > { %v1635_v17 = vmul.f32 %v1630_v52, %v3842_v14  ;;  %v3113_v52 = vld [vmem:[%s3803_s18 + $0x6c] sm:$0xf0]  ;;  %1977 = vmatpush.bf16.msra.mxu0 %v2833_v0  ;;  %v3150_v0 = vld [vmem:[%s3809_s29 + $0x98] sm:$0xff] }
 0x67d   : > { %v4230_v60 = vsub.f32 %v4210_v44, %v1635_v17  ;;  %v3111_v17 = vld [vmem:[%s3803_s18 + $0x64] sm:$0xf] }
 0x67f   : > { %v1643_v57 = vmul.f32 %v4230_v60, %v4230_v60  ;;  %1978 = vmatpush.bf16.msra.mxu0 %v2817_v12 }
 0x681   : > { %1649 = vadd.xlane.f32.xlu0 %v1643_v57  ;;  %v2821_v57 = vor.u32 %v3113_v52, %v2820_v51 }
 0x682   : > { %v1632_v39 = vpop.xlane.xlu0 %1631 }
 0x683   : > { %v1636_v56 = vmul.f32 %v1632_v39, %v3842_v14  ;;  %v2822_v39 = vld [vmem:[%s3803_s18 + $0x70] sm:$0xf0]  ;;  %1920 = vmatpush.bf16.msrb.mxu1 %v2821_v57  ;;  %1979 = vmatpush.bf16.msra.mxu0 %v2801_v3  ;;  %v3152_v3 = vld [vmem:[%s3809_s29 + $0xa8] sm:$0xff] }
 0x684   : > { %v2825_v59 = vor.u32 %v3111_v17, %v2822_v39 }
 0x685   : > { %v4236_v58 = vsub.f32 %v4213_v27, %v1636_v56  ;;  %v2828_v56 = vld [vmem:[%s3803_s18 + $0x68] sm:$0xf] }
 0x686   : > { %1939 = vmatpush.bf16.msra.mxu2 %v2825_v59 }
 0x687   : > { %v1644_v21 = vmul.f32 %v4236_v58, %v4236_v58  ;;  %1921 = vmatpush.bf16.msrb.mxu1 %v2805_v7  ;;  %1980 = vmatpush.bf16.msra.mxu0 %v2785_v54  ;;  %v3138_v7 = vld [vmem:[%s3809_s29 + $0x38] sm:$0xff] }
 0x689   : > { %1651 = vadd.xlane.f32.xlu2 %v1644_v21  ;;  %v3114_v21 = vld [vmem:[%s3803_s18 + $0x74] sm:$0xf0] }
 0x68a   : > { %v2829_v29 = vor.u32 %v3114_v21, %v2828_v56  ;;  %1940 = vmatpush.bf16.msra.mxu2 %v2809_v61  ;;  %v3154_v61 = vld [vmem:[%s3809_s29 + $0xb8] sm:$0xff] }
 0x68b   : > { %1922 = vmatpush.bf16.msrb.mxu1 %v2789_v41  ;;  %2329 = vmatpush.bf16.msrb.mxu0 %v3162_v8  ;;  %v3153_v41 = vld [vmem:[%s3809_s29 + $0xb0] sm:$0xff]  ;;  %v3131_v8 = vld [vmem:[%s3809_s29] sm:$0xff] }
 0x68c   : > { %1958 = vmatpush.bf16.msrb.mxu3 %v2829_v29 }
 0x68e   : > { %1941 = vmatpush.bf16.msra.mxu2 %v2793_v45  ;;  %v3136_v45 = vld [vmem:[%s3809_s29 + $0x28] sm:$0xff] }
 0x68f   : > { %1923 = vmatpush.bf16.msrb.mxu1 %v2773_v32  ;;  %2330 = vmatpush.bf16.msrb.mxu0 %v3161_v34  ;;  %v3135_v32 = vld [vmem:[%s3809_s29 + $0x20] sm:$0xff] }
 0x690   : > { %1959 = vmatpush.bf16.msrb.mxu3 %v2813_v11  ;;  %v2625_v34 = vld [vmem:[%s3811_s19 + $0x5] ss:$8 sm:$0xf] }
 0x692   : > { %1942 = vmatpush.bf16.msra.mxu2 %v2777_v42 }
 0x693   : > { %2272 = vmatpush.bf16.msra.mxu1 %v3138_v7  ;;  %v3149_v7 = vld [vmem:[%s3809_s29 + $0x90] sm:$0xff] }
 0x694   : > { %1960 = vmatpush.bf16.msrb.mxu3 %v2797_v48  ;;  %v3160_v48 = vld [vmem:[%s3809_s29 + $0xe8] sm:$0xff] }
 0x695   : > { %2331 = vmatpush.bf16.msrb.mxu0 %v3160_v48 }
 0x696   : > { %2291 = vmatpush.bf16.msrb.mxu2 %v3146_v43  ;;  %v3140_v43 = vld [vmem:[%s3809_s29 + $0x48] sm:$0xff] }
 0x697   : > { %2273 = vmatpush.bf16.msra.mxu1 %v3137_v37  ;;  %v3147_v37 = vld [vmem:[%s3809_s29 + $0x80] sm:$0xff] }
 0x698   : > { %1961 = vmatpush.bf16.msrb.mxu3 %v2781_v22 }
 0x699   : > { %2332 = vmatpush.bf16.msrb.mxu0 %v3159_v28 }
 0x69a   : > { %2292 = vmatpush.bf16.msrb.mxu2 %v3145_v13  ;;  %v1751_v13 = vperm.slane %v2625_v34, 3 }
 0x69b   : > { %2274 = vmatpush.bf16.msra.mxu1 %v3136_v45 }
 0x69c   : > { %2310 = vmatpush.bf16.msra.mxu3 %v3154_v61  ;;  %v3148_v61 = vld [vmem:[%s3809_s29 + $0x88] sm:$0xff] }
 0x69f   : > { %2275 = vmatpush.bf16.msra.mxu1 %v3135_v32 }
 0x6a0   : > { %2311 = vmatpush.bf16.msra.mxu3 %v3153_v41 }
 0x6a4   : > { %2312 = vmatpush.bf16.msra.mxu3 %v3152_v3 }
 0x6e4   : > { %v1646_v26 = vpop.xlane.xlu2 %1645 }
 0x6e5   : > { %v1653_v9 = vmul.f32 %v1646_v26, %v3842_v14  ;;  %v3144_v26 = vld [vmem:[%s3809_s29 + $0x68] sm:$0xff] }
 0x6e6   : > { %2293 = vmatpush.bf16.msrb.mxu2 %v3144_v26 }
 0x6e7   : > { %v1657_v40 = vadd.f32 1e-05, %v1653_v9 }
 0x6e9   : > { %3336 = vrsqrt.f32 %v1657_v40  ;;  %vm1667_vm5 = vweird.f32 %v1657_v40 }
 0x6ec   : > { %v1648_v31 = vpop.xlane.xlu1 %1647 }
 0x6ed   : > { %v1654_v33 = vmul.f32 %v1648_v31, %v3842_v14 }
 0x6ef   : > { %v3337_v49 = vpop.eup %3336  ;;  %v1658_v50 = vadd.f32 1e-05, %v1654_v33 }
 0x6f0   : > { %v1662_v51 = vmul.f32 %v3337_v49, %v1657_v40  ;;  %vm1668_vm4 = vweird.f32 %v3337_v49 }
 0x6f1   : > { %3338 = vrsqrt.f32 %v1658_v50  ;;  %vm4310_vm6 = vmor %vm1667_vm5, %vm1668_vm4  ;;  %vm1677_vm8 = vweird.f32 %v1658_v50 }
 0x6f2   : > { %v1663_v52 = vmul.f32 %v3337_v49, %v1662_v51 }
 0x6f4   : > { %v1664_v17 = vmul.f32 0.5, %v1663_v52  ;;  %v1650_v57 = vpop.xlane.xlu0 %1649 }
 0x6f5   : > { %v1655_v39 = vmul.f32 %v1650_v57, %v3842_v14 }
 0x6f6   : > { %v1665_v56 = vsub.f32 1.5, %v1664_v17 }
 0x6f7   : > { %v3339_v21 = vpop.eup %3338  ;;  %v4307_v59 = vadd.f32 1e-05, %v1655_v39 }
 0x6f8   : > { %v1666_v29 = vmul.f32 %v3337_v49, %v1665_v56  ;;  %v1672_v62 = vmul.f32 %v3339_v21, %v1658_v50  ;;  %vm1678_vm7 = vweird.f32 %v3339_v21 }
 0x6f9   : > { %3340 = vrsqrt.f32 %v4307_v59  ;;  %vm1679_vm9 = vmor %vm1677_vm8, %vm1678_vm7  ;;  %vm1687_vm11 = vweird.f32 %v4307_v59 }
 0x6fa   : > { %v1673_v63 = vmul.f32 %v3339_v21, %v1672_v62  ;;  %v1670_v20 = vsel %vm4310_vm6, %v3337_v49, %v1666_v29  ;;  %v3133_v29 = vld [vmem:[%s3809_s29 + $0x10] sm:$0xff] }
 0x6fb   : > { %v1701_v23 = vmul.f32 %v1670_v20, %v4218_v19  ;;  %v3157_v62 = vld [vmem:[%s3809_s29 + $0xd0] sm:$0xff]  ;;  %v3132_v20 = vld [vmem:[%s3809_s29 + $0x8] sm:$0xff] }
 0x6fc   : > { %v1674_v1 = vmul.f32 0.5, %v1673_v63  ;;  %v1652_v6 = vpop.xlane.xlu2 %1651  ;;  %v3142_v63 = vld [vmem:[%s3809_s29 + $0x58] sm:$0xff] }
 0x6fd   : > { %v1656_v5 = vmul.f32 %v1652_v6, %v3842_v14  ;;  %v1705_v25 = vmul.f32 %v1701_v23, %v491_v16  ;;  %v3141_v6 = vld [vmem:[%s3809_s29 + $0x50] sm:$0xff] }
 0x6fe   : > { %v1675_v11 = vsub.f32 1.5, %v1674_v1  ;;  %v3156_v1 = vld [vmem:[%s3809_s29 + $0xc8] sm:$0xff] }
 0x6ff   : > { %v3341_v12 = vpop.eup %3340  ;;  %v1660_v46 = vadd.f32 1e-05, %v1656_v5  ;;  %v1709_v38 = vadd.f32 %v1705_v25, %v492_v53  ;;  %v3155_v5 = vld [vmem:[%s3809_s29 + $0xc0] sm:$0xff] }
 0x700   : > { %v1676_v14 = vmul.f32 %v3339_v21, %v1675_v11  ;;  %v1682_v15 = vmul.f32 %v3341_v12, %v4307_v59  ;;  %vm1688_vm10 = vweird.f32 %v3341_v12  ;;  %v3151_v59 = vld [vmem:[%s3809_s29 + $0xa0] sm:$0xff] }
 0x701   : > { %3342 = vrsqrt.f32 %v1660_v46  ;;  %vm1689_vm12 = vmor %vm1687_vm11, %vm1688_vm10  ;;  %vm1697_vm14 = vweird.f32 %v1660_v46  ;;  %2313 = vmatpush.bf16.msra.mxu3 %v3151_v59  ;;  %v3139_v11 = vld [vmem:[%s3809_s29 + $0x40] sm:$0xff] }
 0x702   : > { %v1680_v18 = vsel %vm1679_vm9, %v3339_v21, %v1676_v14  ;;  %v1683_v19 = vmul.f32 %v3341_v12, %v1682_v15  ;;  %v3158_v21 = vld [vmem:[%s3809_s29 + $0xd8] sm:$0xff] }
 0x703   : > { %v1702_v24 = vmul.f32 %v1680_v18, %v4224_v10  ;;  %2333 = vmatpush.bf16.msrb.mxu0 %v3158_v21 }
 0x704   : > { %v1684_v9 = vmul.f32 0.5, %v1683_v19  ;;  %v1749_v19 = vperm.slane %v2625_v34, 1 }
 0x705   : > { %v1706_v30 = vmul.f32 %v1702_v24, %v491_v16  ;;  %2314 = vmatpush.bf16.msra.mxu3 %v3150_v0  ;;  %v1750_v24 = vperm.slane %v2625_v34, 2 }
 0x706   : > { %v1685_v55 = vsub.f32 1.5, %v1684_v9 }
 0x707   : > { %v3343_v35 = vpop.eup %3342  ;;  %v1710_v40 = vadd.f32 %v1706_v30, %v492_v53  ;;  %2334 = vmatpush.bf16.msrb.mxu0 %v3157_v62 }
 0x708   : > { %v1686_v42 = vmul.f32 %v3341_v12, %v1685_v55  ;;  %v1692_v10 = vmul.f32 %v3343_v35, %v1660_v46  ;;  %vm1698_vm13 = vweird.f32 %v3343_v35  ;;  %v1748_v46 = vperm.slane %v2625_v34, 0 }
 0x709   : > { %v1713_v22 = vpack.c.bf16 %v1710_v40, %v1709_v38  ;;  %vm1699_vm15 = vmor %vm1697_vm14, %vm1698_vm13  ;;  %2315 = vmatpush.bf16.msra.mxu3 %v3149_v7 }
 0x70a   : > { %v1693_v2 = vmul.f32 %v3343_v35, %v1692_v10  ;;  %v1690_v47 = vsel %vm1689_vm12, %v3341_v12, %v1686_v42 }
 0x70b   : > { %1924 = vmatmul.bf16.vlgmr.msrb.gmra.mxu1 %v1713_v22  ;;  %1943 = vmatmul.bf16.vlgmr.msra.gmra.mxu2 %v1713_v22  ;;  %v1703_v33 = vmul.f32 %v1690_v47, %v4230_v60  ;;  %v3134_v60 = vld [vmem:[%s3809_s29 + $0x18] sm:$0xff] }
 0x70c   : > { %v1694_v54 = vmul.f32 0.5, %v1693_v2  ;;  %1962 = vmatmul.bf16.vlgmr.msrb.gmra.mxu3 %v1713_v22  ;;  %1981 = vmatmul.bf16.vlgmr.msra.gmra.mxu0 %v1713_v22 }
 0x70d   : > { %v1707_v52 = vmul.f32 %v1703_v33, %v491_v16  ;;  %2276 = vmatpush.bf16.msra.mxu1 %v3134_v60  ;;  %2335 = vmatpush.bf16.msrb.mxu0 %v3156_v1 }
 0x70e   : > { %v1695_v31 = vsub.f32 1.5, %v1694_v54  ;;  %2316 = vmatpush.bf16.msra.mxu3 %v3148_v61 }
 0x70f   : > { %v1711_v57 = vadd.f32 %v1707_v52, %v492_v53 }
 0x710   : > { %v1696_v49 = vmul.f32 %v3343_v35, %v1695_v31 }
 0x711   : > { %2277 = vmatpush.bf16.msra.mxu1 %v3133_v29  ;;  %2336 = vmatpush.bf16.msrb.mxu0 %v3155_v5 }
 0x712   : > { %v1700_v50 = vsel %vm1699_vm15, %v3343_v35, %v1696_v49  ;;  %2317 = vmatpush.bf16.msra.mxu3 %v3147_v37 }
 0x713   : > { %v1704_v51 = vmul.f32 %v1700_v50, %v4236_v58  ;;  %v3143_v58 = vld [vmem:[%s3809_s29 + $0x60] sm:$0xff] }
 0x714   : > { %2294 = vmatpush.bf16.msrb.mxu2 %v3143_v58 }
 0x715   : > { %v1708_v17 = vmul.f32 %v1704_v51, %v491_v16  ;;  %2278 = vmatpush.bf16.msra.mxu1 %v3132_v20 }
 0x717   : > { %v1712_v39 = vadd.f32 %v1708_v17, %v492_v53 }
 0x718   : > { %2295 = vmatpush.bf16.msrb.mxu2 %v3142_v63 }
 0x719   : > { %v1714_v56 = vpack.c.bf16 %v1712_v39, %v1711_v57  ;;  %2279 = vmatpush.bf16.msra.mxu1 %v3131_v8 }
 0x71b   : > { %1929 = vmatmul.bf16.gmra.mxu1 %v1714_v56  ;;  %1948 = vmatmul.bf16.gmra.mxu2 %v1714_v56 }
 0x71c   : > { %1967 = vmatmul.bf16.gmra.mxu3 %v1714_v56  ;;  %1986 = vmatmul.bf16.gmra.mxu0 %v1714_v56 }
 0x71d   : > { %2296 = vmatpush.bf16.msrb.mxu2 %v3141_v6 }
 0x721   : > { %2297 = vmatpush.bf16.msrb.mxu2 %v3140_v43 }
 0x725   : > { %2298 = vmatpush.bf16.msrb.mxu2 %v3139_v11 }
 0x788   : > { %v1925_v12 = vpop.f32.mrf.mxu1 }
 0x789   : > { %v1982_v23 = vpop.f32.mrf.mxu0  ;;  %v1926_v14 = vadd.f32 %v1925_v12, %v1748_v46 }
 0x78a   : > { %v1983_v16 = vadd.f32 %v1982_v23, %v1751_v13  ;;  %v495_v23 = vld [vmem:[%s3811_s19 + $0x6] ss:$0 sm:$0xff] }
 0x78b   : > { %v1992_v26 = vmax.f32 %v1926_v14, 0.0 }
 0x78c   : > { %v1995_v9 = vmax.f32 %v1983_v16, 0.0 }
 0x78e   : > { %v1944_v41 = vpop.f32.mrf.mxu2 }
 0x78f   : > { %v1963_v15 = vpop.f32.mrf.mxu3  ;;  %v1945_v30 = vadd.f32 %v1944_v41, %v1749_v19 }
 0x790   : > { %v1927_v18 = vpop.f32.mrf.mxu1  ;;  %v1964_v32 = vadd.f32 %v1963_v15, %v1750_v24 }
 0x791   : > { %v1928_v45 = vadd.f32 %v1927_v18, %v1748_v46  ;;  %v1984_v48 = vpop.f32.mrf.mxu0  ;;  %v1993_v22 = vmax.f32 %v1945_v30, 0.0 }
 0x792   : > { %v1985_v25 = vadd.f32 %v1984_v48, %v1751_v13  ;;  %v1994_v54 = vmax.f32 %v1964_v32, 0.0 }
 0x793   : > { %v1996_v3 = vmax.f32 %v1928_v45, 0.0 }
 0x794   : > { %v1999_v53 = vmax.f32 %v1985_v25, 0.0 }
 0x795   : > { %v2008_v55 = vpack.c.bf16 %v1996_v3, %v1992_v26 }
 0x796   : > { %v2011_v28 = vpack.c.bf16 %v1999_v53, %v1995_v9  ;;  %v1946_v35 = vpop.f32.mrf.mxu2 }
 0x797   : > { %v1947_v38 = vadd.f32 %v1946_v35, %v1749_v19  ;;  %v1965_v40 = vpop.f32.mrf.mxu3  ;;  %2280 = vmatmul.bf16.vlgmr.msra.gmra.mxu1 %v2008_v55 }
 0x798   : > { %v1966_v42 = vadd.f32 %v1965_v40, %v1750_v24  ;;  %2337 = vmatmul.bf16.vlgmr.msrb.gmra.mxu0 %v2011_v28  ;;  %v1930_v10 = vpop.f32.mrf.mxu1 }
 0x799   : > { %v1997_v2 = vmax.f32 %v1947_v38, 0.0  ;;  %v1987_v47 = vpop.f32.mrf.mxu0  ;;  %v1931_v51 = vadd.f32 %v1930_v10, %v1748_v46 }
 0x79a   : > { %v1998_v31 = vmax.f32 %v1966_v42, 0.0  ;;  %v1988_v17 = vadd.f32 %v1987_v47, %v1751_v13 }
 0x79b   : > { %v2009_v33 = vpack.c.bf16 %v1997_v2, %v1993_v22  ;;  %v2000_v21 = vmax.f32 %v1931_v51, 0.0 }
 0x79c   : > { %v2010_v49 = vpack.c.bf16 %v1998_v31, %v1994_v54  ;;  %v2003_v59 = vmax.f32 %v1988_v17, 0.0 }
 0x79d   : > { %2299 = vmatmul.bf16.vlgmr.msrb.gmra.mxu2 %v2009_v33 }
 0x79e   : > { %2318 = vmatmul.bf16.vlgmr.msra.gmra.mxu3 %v2010_v49  ;;  %v1949_v50 = vpop.f32.mrf.mxu2 }
 0x79f   : > { %v1968_v52 = vpop.f32.mrf.mxu3  ;;  %v1950_v62 = vadd.f32 %v1949_v50, %v1749_v19 }
 0x7a0   : > { %v1932_v57 = vpop.f32.mrf.mxu1  ;;  %v1969_v0 = vadd.f32 %v1968_v52, %v1750_v24 }
 0x7a1   : > { %v1933_v39 = vadd.f32 %v1932_v57, %v1748_v46  ;;  %v1989_v56 = vpop.f32.mrf.mxu0  ;;  %v2001_v5 = vmax.f32 %v1950_v62, 0.0 }
 0x7a2   : > { %v1990_v60 = vadd.f32 %v1989_v56, %v1751_v13  ;;  %v2002_v61 = vmax.f32 %v1969_v0, 0.0 }
 0x7a3   : > { %v2004_v58 = vmax.f32 %v1933_v39, 0.0 }
 0x7a4   : > { %v2007_v29 = vmax.f32 %v1990_v60, 0.0 }
 0x7a5   : > { %v2012_v63 = vpack.c.bf16 %v2004_v58, %v2000_v21 }
 0x7a6   : > { %v1951_v20 = vpop.f32.mrf.mxu2  ;;  %v2015_v1 = vpack.c.bf16 %v2007_v29, %v2003_v59 }
 0x7a7   : > { %v1952_v6 = vadd.f32 %v1951_v20, %v1749_v19  ;;  %v1970_v7 = vpop.f32.mrf.mxu3  ;;  %2285 = vmatmul.bf16.gmra.mxu1 %v2012_v63 }
 0x7a8   : > { %v1971_v8 = vadd.f32 %v1970_v7, %v1750_v24  ;;  %2342 = vmatmul.bf16.gmra.mxu0 %v2015_v1 }
 0x7a9   : > { %v2005_v43 = vmax.f32 %v1952_v6, 0.0 }
 0x7aa   : > { %v2006_v11 = vmax.f32 %v1971_v8, 0.0 }
 0x7ab   : > { %v2013_v37 = vpack.c.bf16 %v2005_v43, %v2001_v5 }
 0x7ac   : > { %v2014_v34 = vpack.c.bf16 %v2006_v11, %v2002_v61 }
 0x7ad   : > { %2304 = vmatmul.bf16.gmra.mxu2 %v2013_v37 }
 0x7ae   : > { %2323 = vmatmul.bf16.gmra.mxu3 %v2014_v34 }
 0x814   : > { %v2281_v12 = vpop.f32.mrf.mxu1 }
 0x815   : > { %v2338_v46 = vpop.f32.mrf.mxu0  ;;  %v2282_v13 = vadd.f32 %v2281_v12, %v495_v23 }
 0x81c   : > { %v2283_v41 = vpop.f32.mrf.mxu1 }
 0x81d   : > { %v2284_v45 = vadd.f32 %v2283_v41, %v495_v23  ;;  %v2340_v24 = vpop.f32.mrf.mxu0 }
 0x820   : > { %v2300_v14 = vpop.f32.mrf.mxu2 }
 0x821   : > { %v2301_v15 = vadd.f32 %v2300_v14, %v2282_v13  ;;  %v2319_v16 = vpop.f32.mrf.mxu3 }
 0x823   : > { %v2320_v18 = vadd.f32 %v2319_v16, %v2301_v15 }
 0x824   : > { %v2286_v9 = vpop.f32.mrf.mxu1 }
 0x825   : > { %v2339_v19 = vadd.f32 %v2338_v46, %v2320_v18  ;;  %v2287_v55 = vadd.f32 %v2286_v9, %v495_v23  ;;  %v2343_v40 = vpop.f32.mrf.mxu0 }
 0x827   : > { %v2348_v48 = vadd.f32 %v2339_v19, %v4204_v4 }
 0x828   : > { %v2302_v25 = vpop.f32.mrf.mxu2 }
 0x829   : > { %2352 = vst [vmem:[#allocation2 + $0x10] sm:$0xff] %v2348_v48  ;;  %v2303_v26 = vadd.f32 %v2302_v25, %v2284_v45  ;;  %v2321_v3 = vpop.f32.mrf.mxu3 }
 0x82b   : > { %v2322_v53 = vadd.f32 %v2321_v3, %v2303_v26 }
 0x82c   : > { %v2288_v10 = vpop.f32.mrf.mxu1 }
 0x82d   : > { %v2341_v30 = vadd.f32 %v2340_v24, %v2322_v53  ;;  %v2289_v4 = vadd.f32 %v2288_v10, %v495_v23  ;;  %v2345_v49 = vpop.f32.mrf.mxu0 }
 0x82f   : > { %v2349_v32 = vadd.f32 %v2341_v30, %v4207_v36 }
 0x830   : > { %v2305_v28 = vpop.f32.mrf.mxu2 }
 0x831   : > { %2353 = vst [vmem:[#allocation2] sm:$0xff] %v2349_v32  ;;  %v2306_v35 = vadd.f32 %v2305_v28, %v2287_v55  ;;  %v2324_v38 = vpop.f32.mrf.mxu3 }
 0x833   : > { %v2325_v42 = vadd.f32 %v2324_v38, %v2306_v35 }
 0x835   : > { %v2344_v22 = vadd.f32 %v2343_v40, %v2325_v42 }
 0x837   : > { %v2350_v2 = vadd.f32 %v2344_v22, %v4210_v44 }
 0x838   : > { %v2307_v47 = vpop.f32.mrf.mxu2 }
 0x839   : > { %2354 = vst [vmem:[#allocation2 + $0x18] sm:$0xff] %v2350_v2  ;;  %v2308_v54 = vadd.f32 %v2307_v47, %v2289_v4  ;;  %v2326_v31 = vpop.f32.mrf.mxu3 }
 0x83b   : > { %v2327_v33 = vadd.f32 %v2326_v31, %v2308_v54 }
 0x83d   : > { %v2346_v50 = vadd.f32 %v2345_v49, %v2327_v33  ;;  %2359 = sbr.rel (%p3026_p1) target bundleno = 2284 (0x8ec), region = 80 }
 0x83f   : > { %v2351_v36 = vadd.f32 %v2346_v50, %v4213_v27 }
 0x841   : > { %2355 = vst [vmem:[#allocation2 + $0x8] sm:$0xff] %v2351_v36 }
 0x842   : > { %v3170_v51 = vld [vmem:[#allocation12 + $0x38] sm:$0xff]  ;;  %v3169_v52 = vld [vmem:[#allocation12 + $0x30] sm:$0xff]  ;;  %v3168_v44 = vld [vmem:[#allocation12 + $0x28] sm:$0xff]  ;;  %v2360_v60 = vpack.c.bf16 %v2349_v32, %v2348_v48  ;;  %v2361_v21 = vpack.c.bf16 %v2351_v36, %v2350_v2 }
 0x843   : > { %2430 = vmatpush.bf16.msra.mxu0 %v3170_v51  ;;  %3171 = vmatpush.bf16.msra.mxu1 %v3170_v51  ;;  %v3167_v17 = vld [vmem:[#allocation12 + $0x20] sm:$0xff]  ;;  %v3166_v57 = vld [vmem:[#allocation12 + $0x18] sm:$0xff]  ;;  %v3165_v27 = vld [vmem:[#allocation12 + $0x10] sm:$0xff] }
 0x844   : > { %v3164_v39 = vld [vmem:[#allocation12 + $0x8] sm:$0xff]  ;;  %v3163_v56 = vld [vmem:[#allocation12] sm:$0xff] }
 0x845   : > { %v3348_v58 = vld [vmem:[%s4392_s7] ss:$0 sm:$0xff] }
 0x847   : > { %2431 = vmatpush.bf16.msra.mxu0 %v3169_v52  ;;  %3172 = vmatpush.bf16.msra.mxu1 %v3169_v52 }
 0x84b   : > { %2432 = vmatpush.bf16.msra.mxu0 %v3168_v44  ;;  %3173 = vmatpush.bf16.msra.mxu1 %v3168_v44 }
 0x84f   : > { %2433 = vmatpush.bf16.msra.mxu0 %v3167_v17  ;;  %3174 = vmatpush.bf16.msra.mxu1 %v3167_v17 }
 0x853   : > { %2434 = vmatpush.bf16.msra.mxu0 %v3166_v57  ;;  %3175 = vmatpush.bf16.msra.mxu1 %v3166_v57 }
 0x857   : > { %2435 = vmatpush.bf16.msra.mxu0 %v3165_v27  ;;  %3176 = vmatpush.bf16.msra.mxu1 %v3165_v27 }
 0x85b   : > { %2436 = vmatpush.bf16.msra.mxu0 %v3164_v39  ;;  %3177 = vmatpush.bf16.msra.mxu1 %v3164_v39 }
 0x85f   : > { %2437 = vmatpush.bf16.msra.mxu0 %v3163_v56  ;;  %3178 = vmatpush.bf16.msra.mxu1 %v3163_v56 }
 0x862   : > { %2438 = vmatmul.bf16.vlgmr.msra.gmra.mxu0 %v2360_v60  ;;  %2443 = vmatmul.bf16.vlgmr.msra.gmra.mxu1 %v2361_v21 }
 0x8df   : > { %v2439_v59 = vpop.f32.mrf.mxu0  ;;  %v2444_v29 = vpop.f32.mrf.mxu1 }
 0x8e0   : > { %v2440_v62 = vadd.f32 %v3348_v58, %v2439_v59  ;;  %v2445_v63 = vadd.f32 %v3348_v58, %v2444_v29 }
 0x8e2   : > { %2449 = vst [vmem:[#allocation13] sm:$0xff] %v2440_v62 }
 0x8e3   : > { %2451 = vst [vmem:[#allocation13 + $0x10] sm:$0xff] %v2445_v63 }
 0x8e7   : > { %v2441_v0 = vpop.f32.mrf.mxu0  ;;  %v2446_v20 = vpop.f32.mrf.mxu1 }
 0x8e8   : > { %v2442_v1 = vadd.f32 %v3348_v58, %v2441_v0  ;;  %v2447_v6 = vadd.f32 %v3348_v58, %v2446_v20 }
 0x8ea   : > { %2450 = vst [vmem:[#allocation13 + $0x8] sm:$0xff] %v2442_v1 }
 0x8eb   : > { %2452 = vst [vmem:[#allocation13 + $0x18] sm:$0xff] %v2447_v6 }
 0x8ec PF: > { %p3216_p4 = scmp.eq.s32.totalorder %s3655_s9, 1  ;;  %s3588_s18 = smov [#allocation13]  }
 0x8ed   : > { %s2458_s14 = sshll.u32 %s3588_s18, 4  ;;  %s4424_s19 = sld [smem:[#allocation24_spill]]  ;;  %s2459_s14 = int_to_ptr.vmem [resolvable:$true] %s2458_s14 }
 0x8ee   : > { %s3589_s6 = smov 128   ;;  %s3590_s27 = smov 8  }
 0x8f3   : > { %s2460_s16 = sshll.u32 %s4424_s19, 4  ;;  %s2461_s16 = int_to_ptr.hbm [resolvable:$true] %s2460_s16 }
 0x8f4   : > { %3193 = dma.vmem_to_hbm [thread:$0]  (%p3216_p4), %s2459_s14, 512, %s2461_s16, [#allocation6], %s3589_s6, %s3589_s6, %s3590_s27  }
 0x8f5   : > { %3560 = dma.done.wait (%p3216_p4), [#allocation6], 512  }
 0x8f6   : > { %3562 = vsyncadd (%p3216_p4), [#allocation6], 4294966784 }
 0x8f7 PF: > { %s4425_s30 = sld [smem:[#allocation20_spill]]  ;;  %s4428_s27 = smov %s3569_s28 }
 0x8f8   : > { %s4426_s20 = sld [smem:[#allocation19_spill]] }
 0x8f9   : > { %s4427_s29 = sld [smem:[#allocation21_spill]] }
 0x8fd   : > { %p25_p5 = scmp.ge.s32.totalorder %s4425_s30, 4  }
 0x8fe   : > { %s4429_s28 = smov %s4426_s20 }
 0x8ff   :  { %27 = sbr.rel (!%p25_p5) target bundleno = 12 (0xc), region = 142 }
 0x904   :  { %2477 = vsyncpa [#allocation5], 1 }
 0x905   :  { %2479 = vsyncpa [#allocation5 + $0x1], 1 }
 0x906   :  { %2480 = vsyncpa [#allocation8], 1 }
 0x907   :  { %2482 = vsyncpa [#allocation8 + $0x1], 1 }
 0x908   :  { %2483 = vsyncpa [#allocation11], 1 }
 0x909   :  { %2485 = vsyncpa [#allocation11 + $0x1], 1 }
 0x90a   :  { %2486 = vsyncpa [#allocation6], 1 }
 0x90b   :  { %2488 = vsyncpa [#allocation6 + $0x1], 1 }

</bundles_post_ra>
